<compile_context>
chip_gen: v7x
topology: tpu7x:2x2x1
jax: 0.10.0
libtpu: 0.0.40
codegen_flags: <defaults>
</compile_context>

<pallas_src>
import jax
import jax.numpy as jnp
from jax.experimental import pallas as pl
from jax.experimental.pallas import tpu as pltpu  # noqa: F401  (TPU backend)

DIM = 32
HEADS = 8
LAYERS = 2
BATCH = 8
HEAD_DIM = DIM // HEADS
SCALE = HEAD_DIM ** -0.5
LN_EPS = 1e-5
FF_DIM = 4 * DIM
OUT_LANES = 128          # lane-dense score output row


def _full_spec(shape):
    # empty grid -> index_map takes no args; block == whole array (in VMEM).
    return pl.BlockSpec(shape, lambda: (0,) * len(shape))


def _erf(x):
    # Abramowitz & Stegun 7.1.26, |err| < 1.5e-7; uses only exp (EUP).
    a1, a2, a3, a4, a5 = (0.254829592, -0.284496736, 1.421413741,
                          -1.453152027, 1.061405429)
    p = 0.3275911
    ax = jnp.abs(x)
    t = 1.0 / (1.0 + p * ax)
    poly = ((((a5 * t + a4) * t + a3) * t + a2) * t + a1) * t
    y = 1.0 - poly * jnp.exp(-ax * ax)
    return jnp.where(x >= 0.0, y, -y)


def _gelu_exact(x):
    # nn.GELU() default (erf form)
    return 0.5 * x * (1.0 + _erf(x * 0.7071067811865476))


def _ln_hat(v):
    # LayerNorm without affine (gamma/beta are folded into downstream weights).
    mu = jnp.mean(v, axis=-1, keepdims=True)
    var = jnp.mean((v - mu) ** 2, axis=-1, keepdims=True)
    return (v - mu) * jax.lax.rsqrt(var + LN_EPS)


# ---------------------------------------------------------------------------
# Single fused kernel: 2 layers of {other = block(other, main); main =
# block(main, other)} followed by the score predictor.
# ---------------------------------------------------------------------------
def fused_recommender_kernel(main_ref, other_ref,
                             w_attn, b_attn, w_ff1, b_ff1, w_ff2, b_ff2,
                             w_sc_a, w_sc_b, b_sc1, w_sc2, b_sc2,
                             out_ref):
    f32 = jnp.float32

    def block(x, ctx, layer):
        # cross-attn with seq_len 1: softmax == 1  =>  out == to_out(values).
        # norm2 affine + to_values + to_out are pre-folded into w_attn/b_attn.
        x1 = x + (jnp.dot(_ln_hat(ctx), w_attn[layer],
                          preferred_element_type=f32) + b_attn[layer])
        # feed-forward; norm3 affine pre-folded into w_ff1/b_ff1.
        h = _gelu_exact(jnp.dot(_ln_hat(x1), w_ff1[layer],
                                preferred_element_type=f32) + b_ff1[layer])
        return x1 + (jnp.dot(h, w_ff2[layer], preferred_element_type=f32)
                     + b_ff2[layer])

    main = main_ref[...]          # (B, D)
    other = other_ref[...]        # (B, D)
    for layer in range(LAYERS):   # static unroll, trip count 2
        other = block(other, main, layer)
        main = block(main, other, layer)

    # score head: concat folded into split matmul  [m|o] @ W1 = m@W1a + o@W1b.
    h = jnp.maximum(
        jnp.dot(main, w_sc_a[...], preferred_element_type=f32)
        + jnp.dot(other, w_sc_b[...], preferred_element_type=f32)
        + b_sc1[...], 0.0)
    # w_sc2/b_sc2 are zero-padded to 128 lanes -> lane-dense unmasked store.
    s = jnp.dot(h, w_sc2[...], preferred_element_type=f32) + b_sc2[...]
    out_ref[...] = 1.0 / (1.0 + jnp.exp(-s))


# ---------------------------------------------------------------------------
# Wrapper
# ---------------------------------------------------------------------------
def cross_attention_recommender(main_embedding, other_embedding, fused_params):
    args = (main_embedding, other_embedding) + tuple(fused_params)
    B = main_embedding.shape[0]
    out = pl.pallas_call(
        fused_recommender_kernel,
        out_shape=jax.ShapeDtypeStruct((B, OUT_LANES), jnp.float32),
        in_specs=[_full_spec(a.shape) for a in args],
        out_specs=_full_spec((B, OUT_LANES)),
    )(*args)
    return out[:, 0]              # score column; .squeeze(-1)


# ---------------------------------------------------------------------------
# Host-side one-time weight folding (exact algebra, no per-call work).
# ---------------------------------------------------------------------------
def fold_params(block_params, score_params):
    w_attn, b_attn, w_ff1, b_ff1, w_ff2, b_ff2 = [], [], [], [], [], []
    for p in block_params:
        (n1w, n1b, n2w, n2b, n3w, n3b,
         wq, bq, wk, bk, wv, bv, wo, bo, w1, b1, w2, b2) = p
        # norm2 affine + to_values + to_out -> one (D, D) matmul
        wa = (n2w.reshape(DIM, 1) * wv) @ wo
        ba = (n2b @ wv + bv) @ wo + bo
        # norm3 affine -> folded into ff first linear
        wf1 = n3w.reshape(DIM, 1) * w1
        bf1 = n3b @ w1 + b1
        w_attn.append(wa); b_attn.append(ba)
        w_ff1.append(wf1); b_ff1.append(bf1)
        w_ff2.append(w2); b_ff2.append(b2)

    w1s, b1s, w2s, b2s = score_params
    w_sc2 = jnp.concatenate(
        [w2s, jnp.zeros((DIM, OUT_LANES - 1), jnp.float32)], axis=1)
    b_sc2 = jnp.concatenate(
        [b2s, jnp.zeros((1, OUT_LANES - 1), jnp.float32)], axis=1)

    return (jnp.stack(w_attn), jnp.stack(b_attn),
            jnp.stack(w_ff1), jnp.stack(b_ff1),
            jnp.stack(w_ff2), jnp.stack(b_ff2),
            w1s[:DIM], w1s[DIM:], b1s, w_sc2, b_sc2)


# ---------------------------------------------------------------------------
# Deterministic parameter init (PyTorch-style uniform bounds; synthetic).
# ---------------------------------------------------------------------------
def init_linear(key, fan_in, fan_out):
    kw, kb = jax.random.split(key)
    bound = 1.0 / (fan_in ** 0.5)
    w = jax.random.uniform(kw, (fan_in, fan_out), jnp.float32, -bound, bound)
    b = jax.random.uniform(kb, (1, fan_out), jnp.float32, -bound, bound)
    return w, b


def init_block(key):
    ks = jax.random.split(key, 6)
    ones = jnp.ones((1, DIM), jnp.float32)
    zeros = jnp.zeros((1, DIM), jnp.float32)
    wq, bq = init_linear(ks[0], DIM, DIM)
    wk, bk = init_linear(ks[1], DIM, DIM)
    wv, bv = init_linear(ks[2], DIM, DIM)
    wo, bo = init_linear(ks[3], DIM, DIM)
    w1, b1 = init_linear(ks[4], DIM, FF_DIM)
    w2, b2 = init_linear(ks[5], FF_DIM, DIM)
    return (ones, zeros, ones, zeros, ones, zeros,
            wq, bq, wk, bk, wv, bv, wo, bo, w1, b1, w2, b2)


def init_score(key):
    k1, k2 = jax.random.split(key)
    w1, b1 = init_linear(k1, 2 * DIM, DIM)   # Linear(2*dim, dim)
    w2, b2 = init_linear(k2, DIM, 1)         # Linear(dim, 1)
    return (w1, b1, w2, b2)


# ---------------------------------------------------------------------------
# Pure-JAX reference (mirrors the PyTorch forward, eval mode / no dropout).
# ---------------------------------------------------------------------------
def _block_ref(x, ctx, params):
    (n1w, n1b, n2w, n2b, n3w, n3b,
     wq, bq, wk, bk, wv, bv, wo, bo, w1, b1, w2, b2) = params

    def ln(v, w, b):
        mu = v.mean(-1, keepdims=True)
        var = ((v - mu) ** 2).mean(-1, keepdims=True)
        return (v - mu) / jnp.sqrt(var + LN_EPS) * w + b

    xn, cn = ln(x, n1w, n1b), ln(ctx, n2w, n2b)
    q, k, v = xn @ wq + bq, cn @ wk + bk, cn @ wv + bv
    B = x.shape[0]
    qh = q.reshape(B, 1, HEADS, HEAD_DIM).transpose(0, 2, 1, 3)
    kh = k.reshape(B, 1, HEADS, HEAD_DIM).transpose(0, 2, 1, 3)
    vh = v.reshape(B, 1, HEADS, HEAD_DIM).transpose(0, 2, 1, 3)
    dots = jnp.einsum('bhqd,bhkd->bhqk', qh, kh) * SCALE
    attn = jax.nn.softmax(dots, axis=-1)
    out = jnp.einsum('bhqk,bhkd->bhqd', attn, vh)
    out = out.transpose(0, 2, 1, 3).reshape(B, DIM)
    x1 = x + (out @ wo + bo)
    x3 = ln(x1, n3w, n3b)
    ff = jax.nn.gelu(x3 @ w1 + b1, approximate=False) @ w2 + b2
    return x1 + ff


def _recommender_ref(main, other, block_params, score_params):
    for p in block_params:
        other = _block_ref(other, main, p)
        main = _block_ref(main, other, p)
    w1, b1, w2, b2 = score_params
    comb = jnp.concatenate([main, other], axis=1)
    h = jnp.maximum(comb @ w1 + b1, 0.0)
    return jax.nn.sigmoid(h @ w2 + b2)[:, 0]


if __name__ == "__main__":
    root = jax.random.PRNGKey(0)
    k_main, k_other, k_blocks, k_score = jax.random.split(root, 4)

    main_embedding = jax.random.normal(k_main, (BATCH, DIM), jnp.float32)
    other_embedding = jax.random.normal(k_other, (BATCH, DIM), jnp.float32)

    block_keys = jax.random.split(k_blocks, LAYERS)
    block_params = [init_block(k) for k in block_keys]
    score_params = init_score(k_score)

    fused_params = fold_params(block_params, score_params)

    score = cross_attention_recommender(main_embedding, other_embedding,
                                        fused_params)
    score = jax.block_until_ready(score)

    ref = _recommender_ref(main_embedding, other_embedding,
                           block_params, score_params)
    assert score.shape == (BATCH,)
    assert bool(jnp.allclose(score, ref, rtol=1e-4, atol=1e-4)), (score, ref)

    print("KERNEL_OK")
</pallas_src>

<mosaic_0001>
module attributes {stable_mosaic.version = 11 : i64} {
  func.func @fused_recommender_kernel(%arg0: memref<8x32xf32, #tpu.memory_space<vmem>>, %arg1: memref<8x32xf32, #tpu.memory_space<vmem>>, %arg2: memref<2x32x32xf32, #tpu.memory_space<vmem>>, %arg3: memref<2x1x32xf32, #tpu.memory_space<vmem>>, %arg4: memref<2x32x128xf32, #tpu.memory_space<vmem>>, %arg5: memref<2x1x128xf32, #tpu.memory_space<vmem>>, %arg6: memref<2x128x32xf32, #tpu.memory_space<vmem>>, %arg7: memref<2x1x32xf32, #tpu.memory_space<vmem>>, %arg8: memref<32x32xf32, #tpu.memory_space<vmem>>, %arg9: memref<32x32xf32, #tpu.memory_space<vmem>>, %arg10: memref<1x32xf32, #tpu.memory_space<vmem>>, %arg11: memref<32x128xf32, #tpu.memory_space<vmem>>, %arg12: memref<1x128xf32, #tpu.memory_space<vmem>>, %arg13: memref<8x128xf32, #tpu.memory_space<vmem>>) attributes {dimension_semantics = [], scalar_prefetch = 0 : i64, scratch_operands = 0 : i64, tpu.core_type = #tpu.core_type<tc>} {
    %c0 = arith.constant 0 : index
    %c0_0 = arith.constant 0 : index
    %0 = vector.load %arg0[%c0, %c0_0] : memref<8x32xf32, #tpu.memory_space<vmem>>, vector<8x32xf32>
    %c0_1 = arith.constant 0 : index
    %c0_2 = arith.constant 0 : index
    %1 = vector.load %arg1[%c0_1, %c0_2] : memref<8x32xf32, #tpu.memory_space<vmem>>, vector<8x32xf32>
    %cst = arith.constant dense<0.000000e+00> : vector<8xf32>
    %2 = vector.multi_reduction <add>, %0, %cst [1] : vector<8x32xf32> to vector<8xf32>
    %3 = vector.shape_cast %2 : vector<8xf32> to vector<8x1xf32>
    %cst_3 = arith.constant 3.200000e+01 : f32
    %4 = vector.broadcast %cst_3 : f32 to vector<8x1xf32>
    %5 = arith.divf %3, %4 : vector<8x1xf32>
    %6 = vector.broadcast %5 : vector<8x1xf32> to vector<8x32xf32>
    %7 = arith.subf %0, %6 : vector<8x32xf32>
    %8 = arith.mulf %7, %7 : vector<8x32xf32>
    %cst_4 = arith.constant dense<0.000000e+00> : vector<8xf32>
    %9 = vector.multi_reduction <add>, %8, %cst_4 [1] : vector<8x32xf32> to vector<8xf32>
    %10 = vector.shape_cast %9 : vector<8xf32> to vector<8x1xf32>
    %cst_5 = arith.constant 3.200000e+01 : f32
    %11 = vector.broadcast %cst_5 : f32 to vector<8x1xf32>
    %12 = arith.divf %10, %11 : vector<8x1xf32>
    %13 = vector.broadcast %5 : vector<8x1xf32> to vector<8x32xf32>
    %14 = arith.subf %0, %13 : vector<8x32xf32>
    %cst_6 = arith.constant 9.99999974E-6 : f32
    %15 = vector.broadcast %cst_6 : f32 to vector<8x1xf32>
    %16 = arith.addf %12, %15 : vector<8x1xf32>
    %17 = math.rsqrt %16 : vector<8x1xf32>
    %18 = vector.broadcast %17 : vector<8x1xf32> to vector<8x32xf32>
    %19 = arith.mulf %14, %18 : vector<8x32xf32>
    %c0_7 = arith.constant 0 : index
    %c0_8 = arith.constant 0 : index
    %c0_9 = arith.constant 0 : index
    %20 = vector.load %arg2[%c0_7, %c0_8, %c0_9] : memref<2x32x32xf32, #tpu.memory_space<vmem>>, vector<1x32x32xf32>
    %21 = vector.shape_cast %20 : vector<1x32x32xf32> to vector<32x32xf32>
    %cst_10 = arith.constant dense<0.000000e+00> : vector<8x32xf32>
    %22 = tpu.matmul %19, %21, %cst_10 {dimension_numbers = #tpu.dot_dimension_numbers<[1], [0], [0], [1], [0, 0, 1, 1], [], []>} : vector<8x32xf32>, vector<32x32xf32>, vector<8x32xf32> -> vector<8x32xf32>
    %c0_11 = arith.constant 0 : index
    %c0_12 = arith.constant 0 : index
    %c0_13 = arith.constant 0 : index
    %23 = vector.load %arg3[%c0_11, %c0_12, %c0_13] : memref<2x1x32xf32, #tpu.memory_space<vmem>>, vector<1x1x32xf32>
    %24 = vector.shape_cast %23 : vector<1x1x32xf32> to vector<1x32xf32>
    %25 = vector.broadcast %24 : vector<1x32xf32> to vector<8x32xf32>
    %26 = arith.addf %22, %25 : vector<8x32xf32>
    %27 = arith.addf %1, %26 : vector<8x32xf32>
    %cst_14 = arith.constant dense<0.000000e+00> : vector<8xf32>
    %28 = vector.multi_reduction <add>, %27, %cst_14 [1] : vector<8x32xf32> to vector<8xf32>
    %29 = vector.shape_cast %28 : vector<8xf32> to vector<8x1xf32>
    %cst_15 = arith.constant 3.200000e+01 : f32
    %30 = vector.broadcast %cst_15 : f32 to vector<8x1xf32>
    %31 = arith.divf %29, %30 : vector<8x1xf32>
    %32 = vector.broadcast %31 : vector<8x1xf32> to vector<8x32xf32>
    %33 = arith.subf %27, %32 : vector<8x32xf32>
    %34 = arith.mulf %33, %33 : vector<8x32xf32>
    %cst_16 = arith.constant dense<0.000000e+00> : vector<8xf32>
    %35 = vector.multi_reduction <add>, %34, %cst_16 [1] : vector<8x32xf32> to vector<8xf32>
    %36 = vector.shape_cast %35 : vector<8xf32> to vector<8x1xf32>
    %cst_17 = arith.constant 3.200000e+01 : f32
    %37 = vector.broadcast %cst_17 : f32 to vector<8x1xf32>
    %38 = arith.divf %36, %37 : vector<8x1xf32>
    %39 = vector.broadcast %31 : vector<8x1xf32> to vector<8x32xf32>
    %40 = arith.subf %27, %39 : vector<8x32xf32>
    %cst_18 = arith.constant 9.99999974E-6 : f32
    %41 = vector.broadcast %cst_18 : f32 to vector<8x1xf32>
    %42 = arith.addf %38, %41 : vector<8x1xf32>
    %43 = math.rsqrt %42 : vector<8x1xf32>
    %44 = vector.broadcast %43 : vector<8x1xf32> to vector<8x32xf32>
    %45 = arith.mulf %40, %44 : vector<8x32xf32>
    %c0_19 = arith.constant 0 : index
    %c0_20 = arith.constant 0 : index
    %c0_21 = arith.constant 0 : index
    %46 = vector.load %arg4[%c0_19, %c0_20, %c0_21] : memref<2x32x128xf32, #tpu.memory_space<vmem>>, vector<1x32x128xf32>
    %47 = vector.shape_cast %46 : vector<1x32x128xf32> to vector<32x128xf32>
    %cst_22 = arith.constant dense<0.000000e+00> : vector<8x128xf32>
    %48 = tpu.matmul %45, %47, %cst_22 {dimension_numbers = #tpu.dot_dimension_numbers<[1], [0], [0], [1], [0, 0, 1, 1], [], []>} : vector<8x32xf32>, vector<32x128xf32>, vector<8x128xf32> -> vector<8x128xf32>
    %c0_23 = arith.constant 0 : index
    %c0_24 = arith.constant 0 : index
    %c0_25 = arith.constant 0 : index
    %49 = vector.load %arg5[%c0_23, %c0_24, %c0_25] : memref<2x1x128xf32, #tpu.memory_space<vmem>>, vector<1x1x128xf32>
    %50 = vector.shape_cast %49 : vector<1x1x128xf32> to vector<1x128xf32>
    %51 = vector.broadcast %50 : vector<1x128xf32> to vector<8x128xf32>
    %52 = arith.addf %48, %51 : vector<8x128xf32>
    %cst_26 = arith.constant 5.000000e-01 : f32
    %53 = vector.broadcast %cst_26 : f32 to vector<8x128xf32>
    %54 = arith.mulf %53, %52 : vector<8x128xf32>
    %cst_27 = arith.constant 0.707106769 : f32
    %55 = vector.broadcast %cst_27 : f32 to vector<8x128xf32>
    %56 = arith.mulf %52, %55 : vector<8x128xf32>
    %57 = math.absf %56 : vector<8x128xf32>
    %cst_28 = arith.constant 0.327591091 : f32
    %58 = vector.broadcast %cst_28 : f32 to vector<8x128xf32>
    %59 = arith.mulf %58, %57 : vector<8x128xf32>
    %cst_29 = arith.constant 1.000000e+00 : f32
    %60 = vector.broadcast %cst_29 : f32 to vector<8x128xf32>
    %61 = arith.addf %60, %59 : vector<8x128xf32>
    %cst_30 = arith.constant 1.000000e+00 : f32
    %62 = vector.broadcast %cst_30 : f32 to vector<8x128xf32>
    %63 = arith.divf %62, %61 : vector<8x128xf32>
    %cst_31 = arith.constant 1.06140542 : f32
    %64 = vector.broadcast %cst_31 : f32 to vector<8x128xf32>
    %65 = arith.mulf %64, %63 : vector<8x128xf32>
    %cst_32 = arith.constant -1.45315206 : f32
    %66 = vector.broadcast %cst_32 : f32 to vector<8x128xf32>
    %67 = arith.addf %65, %66 : vector<8x128xf32>
    %68 = arith.mulf %67, %63 : vector<8x128xf32>
    %cst_33 = arith.constant 1.42141378 : f32
    %69 = vector.broadcast %cst_33 : f32 to vector<8x128xf32>
    %70 = arith.addf %68, %69 : vector<8x128xf32>
    %71 = arith.mulf %70, %63 : vector<8x128xf32>
    %cst_34 = arith.constant -0.284496725 : f32
    %72 = vector.broadcast %cst_34 : f32 to vector<8x128xf32>
    %73 = arith.addf %71, %72 : vector<8x128xf32>
    %74 = arith.mulf %73, %63 : vector<8x128xf32>
    %cst_35 = arith.constant 0.254829586 : f32
    %75 = vector.broadcast %cst_35 : f32 to vector<8x128xf32>
    %76 = arith.addf %74, %75 : vector<8x128xf32>
    %77 = arith.mulf %76, %63 : vector<8x128xf32>
    %cst_36 = arith.constant 0.000000e+00 : f32
    %78 = vector.broadcast %cst_36 : f32 to vector<8x128xf32>
    %79 = arith.subf %78, %57 : vector<8x128xf32>
    %80 = arith.mulf %79, %57 : vector<8x128xf32>
    %81 = math.exp %80 : vector<8x128xf32>
    %82 = arith.mulf %77, %81 : vector<8x128xf32>
    %cst_37 = arith.constant 1.000000e+00 : f32
    %83 = vector.broadcast %cst_37 : f32 to vector<8x128xf32>
    %84 = arith.subf %83, %82 : vector<8x128xf32>
    %cst_38 = arith.constant 0.000000e+00 : f32
    %85 = vector.broadcast %cst_38 : f32 to vector<8x128xf32>
    %86 = arith.cmpf oge, %56, %85 : vector<8x128xf32>
    %cst_39 = arith.constant 0.000000e+00 : f32
    %87 = vector.broadcast %cst_39 : f32 to vector<8x128xf32>
    %88 = arith.subf %87, %84 : vector<8x128xf32>
    %89 = arith.select %86, %84, %88 : vector<8x128xi1>, vector<8x128xf32>
    %cst_40 = arith.constant 1.000000e+00 : f32
    %90 = vector.broadcast %cst_40 : f32 to vector<8x128xf32>
    %91 = arith.addf %90, %89 : vector<8x128xf32>
    %92 = arith.mulf %54, %91 : vector<8x128xf32>
    %c0_41 = arith.constant 0 : index
    %c0_42 = arith.constant 0 : index
    %c0_43 = arith.constant 0 : index
    %93 = vector.load %arg6[%c0_41, %c0_42, %c0_43] : memref<2x128x32xf32, #tpu.memory_space<vmem>>, vector<1x128x32xf32>
    %94 = vector.shape_cast %93 : vector<1x128x32xf32> to vector<128x32xf32>
    %cst_44 = arith.constant dense<0.000000e+00> : vector<8x32xf32>
    %95 = tpu.matmul %92, %94, %cst_44 {dimension_numbers = #tpu.dot_dimension_numbers<[1], [0], [0], [1], [0, 0, 1, 1], [], []>} : vector<8x128xf32>, vector<128x32xf32>, vector<8x32xf32> -> vector<8x32xf32>
    %c0_45 = arith.constant 0 : index
    %c0_46 = arith.constant 0 : index
    %c0_47 = arith.constant 0 : index
    %96 = vector.load %arg7[%c0_45, %c0_46, %c0_47] : memref<2x1x32xf32, #tpu.memory_space<vmem>>, vector<1x1x32xf32>
    %97 = vector.shape_cast %96 : vector<1x1x32xf32> to vector<1x32xf32>
    %98 = vector.broadcast %97 : vector<1x32xf32> to vector<8x32xf32>
    %99 = arith.addf %95, %98 : vector<8x32xf32>
    %100 = arith.addf %27, %99 : vector<8x32xf32>
    %cst_48 = arith.constant dense<0.000000e+00> : vector<8xf32>
    %101 = vector.multi_reduction <add>, %100, %cst_48 [1] : vector<8x32xf32> to vector<8xf32>
    %102 = vector.shape_cast %101 : vector<8xf32> to vector<8x1xf32>
    %cst_49 = arith.constant 3.200000e+01 : f32
    %103 = vector.broadcast %cst_49 : f32 to vector<8x1xf32>
    %104 = arith.divf %102, %103 : vector<8x1xf32>
    %105 = vector.broadcast %104 : vector<8x1xf32> to vector<8x32xf32>
    %106 = arith.subf %100, %105 : vector<8x32xf32>
    %107 = arith.mulf %106, %106 : vector<8x32xf32>
    %cst_50 = arith.constant dense<0.000000e+00> : vector<8xf32>
    %108 = vector.multi_reduction <add>, %107, %cst_50 [1] : vector<8x32xf32> to vector<8xf32>
    %109 = vector.shape_cast %108 : vector<8xf32> to vector<8x1xf32>
    %cst_51 = arith.constant 3.200000e+01 : f32
    %110 = vector.broadcast %cst_51 : f32 to vector<8x1xf32>
    %111 = arith.divf %109, %110 : vector<8x1xf32>
    %112 = vector.broadcast %104 : vector<8x1xf32> to vector<8x32xf32>
    %113 = arith.subf %100, %112 : vector<8x32xf32>
    %cst_52 = arith.constant 9.99999974E-6 : f32
    %114 = vector.broadcast %cst_52 : f32 to vector<8x1xf32>
    %115 = arith.addf %111, %114 : vector<8x1xf32>
    %116 = math.rsqrt %115 : vector<8x1xf32>
    %117 = vector.broadcast %116 : vector<8x1xf32> to vector<8x32xf32>
    %118 = arith.mulf %113, %117 : vector<8x32xf32>
    %c0_53 = arith.constant 0 : index
    %c0_54 = arith.constant 0 : index
    %c0_55 = arith.constant 0 : index
    %119 = vector.load %arg2[%c0_53, %c0_54, %c0_55] : memref<2x32x32xf32, #tpu.memory_space<vmem>>, vector<1x32x32xf32>
    %120 = vector.shape_cast %119 : vector<1x32x32xf32> to vector<32x32xf32>
    %cst_56 = arith.constant dense<0.000000e+00> : vector<8x32xf32>
    %121 = tpu.matmul %118, %120, %cst_56 {dimension_numbers = #tpu.dot_dimension_numbers<[1], [0], [0], [1], [0, 0, 1, 1], [], []>} : vector<8x32xf32>, vector<32x32xf32>, vector<8x32xf32> -> vector<8x32xf32>
    %c0_57 = arith.constant 0 : index
    %c0_58 = arith.constant 0 : index
    %c0_59 = arith.constant 0 : index
    %122 = vector.load %arg3[%c0_57, %c0_58, %c0_59] : memref<2x1x32xf32, #tpu.memory_space<vmem>>, vector<1x1x32xf32>
    %123 = vector.shape_cast %122 : vector<1x1x32xf32> to vector<1x32xf32>
    %124 = vector.broadcast %123 : vector<1x32xf32> to vector<8x32xf32>
    %125 = arith.addf %121, %124 : vector<8x32xf32>
    %126 = arith.addf %0, %125 : vector<8x32xf32>
    %cst_60 = arith.constant dense<0.000000e+00> : vector<8xf32>
    %127 = vector.multi_reduction <add>, %126, %cst_60 [1] : vector<8x32xf32> to vector<8xf32>
    %128 = vector.shape_cast %127 : vector<8xf32> to vector<8x1xf32>
    %cst_61 = arith.constant 3.200000e+01 : f32
    %129 = vector.broadcast %cst_61 : f32 to vector<8x1xf32>
    %130 = arith.divf %128, %129 : vector<8x1xf32>
    %131 = vector.broadcast %130 : vector<8x1xf32> to vector<8x32xf32>
    %132 = arith.subf %126, %131 : vector<8x32xf32>
    %133 = arith.mulf %132, %132 : vector<8x32xf32>
    %cst_62 = arith.constant dense<0.000000e+00> : vector<8xf32>
    %134 = vector.multi_reduction <add>, %133, %cst_62 [1] : vector<8x32xf32> to vector<8xf32>
    %135 = vector.shape_cast %134 : vector<8xf32> to vector<8x1xf32>
    %cst_63 = arith.constant 3.200000e+01 : f32
    %136 = vector.broadcast %cst_63 : f32 to vector<8x1xf32>
    %137 = arith.divf %135, %136 : vector<8x1xf32>
    %138 = vector.broadcast %130 : vector<8x1xf32> to vector<8x32xf32>
    %139 = arith.subf %126, %138 : vector<8x32xf32>
    %cst_64 = arith.constant 9.99999974E-6 : f32
    %140 = vector.broadcast %cst_64 : f32 to vector<8x1xf32>
    %141 = arith.addf %137, %140 : vector<8x1xf32>
    %142 = math.rsqrt %141 : vector<8x1xf32>
    %143 = vector.broadcast %142 : vector<8x1xf32> to vector<8x32xf32>
    %144 = arith.mulf %139, %143 : vector<8x32xf32>
    %c0_65 = arith.constant 0 : index
    %c0_66 = arith.constant 0 : index
    %c0_67 = arith.constant 0 : index
    %145 = vector.load %arg4[%c0_65, %c0_66, %c0_67] : memref<2x32x128xf32, #tpu.memory_space<vmem>>, vector<1x32x128xf32>
    %146 = vector.shape_cast %145 : vector<1x32x128xf32> to vector<32x128xf32>
    %cst_68 = arith.constant dense<0.000000e+00> : vector<8x128xf32>
    %147 = tpu.matmul %144, %146, %cst_68 {dimension_numbers = #tpu.dot_dimension_numbers<[1], [0], [0], [1], [0, 0, 1, 1], [], []>} : vector<8x32xf32>, vector<32x128xf32>, vector<8x128xf32> -> vector<8x128xf32>
    %c0_69 = arith.constant 0 : index
    %c0_70 = arith.constant 0 : index
    %c0_71 = arith.constant 0 : index
    %148 = vector.load %arg5[%c0_69, %c0_70, %c0_71] : memref<2x1x128xf32, #tpu.memory_space<vmem>>, vector<1x1x128xf32>
    %149 = vector.shape_cast %148 : vector<1x1x128xf32> to vector<1x128xf32>
    %150 = vector.broadcast %149 : vector<1x128xf32> to vector<8x128xf32>
    %151 = arith.addf %147, %150 : vector<8x128xf32>
    %cst_72 = arith.constant 5.000000e-01 : f32
    %152 = vector.broadcast %cst_72 : f32 to vector<8x128xf32>
    %153 = arith.mulf %152, %151 : vector<8x128xf32>
    %cst_73 = arith.constant 0.707106769 : f32
    %154 = vector.broadcast %cst_73 : f32 to vector<8x128xf32>
    %155 = arith.mulf %151, %154 : vector<8x128xf32>
    %156 = math.absf %155 : vector<8x128xf32>
    %cst_74 = arith.constant 0.327591091 : f32
    %157 = vector.broadcast %cst_74 : f32 to vector<8x128xf32>
    %158 = arith.mulf %157, %156 : vector<8x128xf32>
    %cst_75 = arith.constant 1.000000e+00 : f32
    %159 = vector.broadcast %cst_75 : f32 to vector<8x128xf32>
    %160 = arith.addf %159, %158 : vector<8x128xf32>
    %cst_76 = arith.constant 1.000000e+00 : f32
    %161 = vector.broadcast %cst_76 : f32 to vector<8x128xf32>
    %162 = arith.divf %161, %160 : vector<8x128xf32>
    %cst_77 = arith.constant 1.06140542 : f32
    %163 = vector.broadcast %cst_77 : f32 to vector<8x128xf32>
    %164 = arith.mulf %163, %162 : vector<8x128xf32>
    %cst_78 = arith.constant -1.45315206 : f32
    %165 = vector.broadcast %cst_78 : f32 to vector<8x128xf32>
    %166 = arith.addf %164, %165 : vector<8x128xf32>
    %167 = arith.mulf %166, %162 : vector<8x128xf32>
    %cst_79 = arith.constant 1.42141378 : f32
    %168 = vector.broadcast %cst_79 : f32 to vector<8x128xf32>
    %169 = arith.addf %167, %168 : vector<8x128xf32>
    %170 = arith.mulf %169, %162 : vector<8x128xf32>
    %cst_80 = arith.constant -0.284496725 : f32
    %171 = vector.broadcast %cst_80 : f32 to vector<8x128xf32>
    %172 = arith.addf %170, %171 : vector<8x128xf32>
    %173 = arith.mulf %172, %162 : vector<8x128xf32>
    %cst_81 = arith.constant 0.254829586 : f32
    %174 = vector.broadcast %cst_81 : f32 to vector<8x128xf32>
    %175 = arith.addf %173, %174 : vector<8x128xf32>
    %176 = arith.mulf %175, %162 : vector<8x128xf32>
    %cst_82 = arith.constant 0.000000e+00 : f32
    %177 = vector.broadcast %cst_82 : f32 to vector<8x128xf32>
    %178 = arith.subf %177, %156 : vector<8x128xf32>
    %179 = arith.mulf %178, %156 : vector<8x128xf32>
    %180 = math.exp %179 : vector<8x128xf32>
    %181 = arith.mulf %176, %180 : vector<8x128xf32>
    %cst_83 = arith.constant 1.000000e+00 : f32
    %182 = vector.broadcast %cst_83 : f32 to vector<8x128xf32>
    %183 = arith.subf %182, %181 : vector<8x128xf32>
    %cst_84 = arith.constant 0.000000e+00 : f32
    %184 = vector.broadcast %cst_84 : f32 to vector<8x128xf32>
    %185 = arith.cmpf oge, %155, %184 : vector<8x128xf32>
    %cst_85 = arith.constant 0.000000e+00 : f32
    %186 = vector.broadcast %cst_85 : f32 to vector<8x128xf32>
    %187 = arith.subf %186, %183 : vector<8x128xf32>
    %188 = arith.select %185, %183, %187 : vector<8x128xi1>, vector<8x128xf32>
    %cst_86 = arith.constant 1.000000e+00 : f32
    %189 = vector.broadcast %cst_86 : f32 to vector<8x128xf32>
    %190 = arith.addf %189, %188 : vector<8x128xf32>
    %191 = arith.mulf %153, %190 : vector<8x128xf32>
    %c0_87 = arith.constant 0 : index
    %c0_88 = arith.constant 0 : index
    %c0_89 = arith.constant 0 : index
    %192 = vector.load %arg6[%c0_87, %c0_88, %c0_89] : memref<2x128x32xf32, #tpu.memory_space<vmem>>, vector<1x128x32xf32>
    %193 = vector.shape_cast %192 : vector<1x128x32xf32> to vector<128x32xf32>
    %cst_90 = arith.constant dense<0.000000e+00> : vector<8x32xf32>
    %194 = tpu.matmul %191, %193, %cst_90 {dimension_numbers = #tpu.dot_dimension_numbers<[1], [0], [0], [1], [0, 0, 1, 1], [], []>} : vector<8x128xf32>, vector<128x32xf32>, vector<8x32xf32> -> vector<8x32xf32>
    %c0_91 = arith.constant 0 : index
    %c0_92 = arith.constant 0 : index
    %c0_93 = arith.constant 0 : index
    %195 = vector.load %arg7[%c0_91, %c0_92, %c0_93] : memref<2x1x32xf32, #tpu.memory_space<vmem>>, vector<1x1x32xf32>
    %196 = vector.shape_cast %195 : vector<1x1x32xf32> to vector<1x32xf32>
    %197 = vector.broadcast %196 : vector<1x32xf32> to vector<8x32xf32>
    %198 = arith.addf %194, %197 : vector<8x32xf32>
    %199 = arith.addf %126, %198 : vector<8x32xf32>
    %cst_94 = arith.constant dense<0.000000e+00> : vector<8xf32>
    %200 = vector.multi_reduction <add>, %199, %cst_94 [1] : vector<8x32xf32> to vector<8xf32>
    %201 = vector.shape_cast %200 : vector<8xf32> to vector<8x1xf32>
    %cst_95 = arith.constant 3.200000e+01 : f32
    %202 = vector.broadcast %cst_95 : f32 to vector<8x1xf32>
    %203 = arith.divf %201, %202 : vector<8x1xf32>
    %204 = vector.broadcast %203 : vector<8x1xf32> to vector<8x32xf32>
    %205 = arith.subf %199, %204 : vector<8x32xf32>
    %206 = arith.mulf %205, %205 : vector<8x32xf32>
    %cst_96 = arith.constant dense<0.000000e+00> : vector<8xf32>
    %207 = vector.multi_reduction <add>, %206, %cst_96 [1] : vector<8x32xf32> to vector<8xf32>
    %208 = vector.shape_cast %207 : vector<8xf32> to vector<8x1xf32>
    %cst_97 = arith.constant 3.200000e+01 : f32
    %209 = vector.broadcast %cst_97 : f32 to vector<8x1xf32>
    %210 = arith.divf %208, %209 : vector<8x1xf32>
    %211 = vector.broadcast %203 : vector<8x1xf32> to vector<8x32xf32>
    %212 = arith.subf %199, %211 : vector<8x32xf32>
    %cst_98 = arith.constant 9.99999974E-6 : f32
    %213 = vector.broadcast %cst_98 : f32 to vector<8x1xf32>
    %214 = arith.addf %210, %213 : vector<8x1xf32>
    %215 = math.rsqrt %214 : vector<8x1xf32>
    %216 = vector.broadcast %215 : vector<8x1xf32> to vector<8x32xf32>
    %217 = arith.mulf %212, %216 : vector<8x32xf32>
    %c1 = arith.constant 1 : index
    %c0_99 = arith.constant 0 : index
    %c0_100 = arith.constant 0 : index
    %218 = vector.load %arg2[%c1, %c0_99, %c0_100] : memref<2x32x32xf32, #tpu.memory_space<vmem>>, vector<1x32x32xf32>
    %219 = vector.shape_cast %218 : vector<1x32x32xf32> to vector<32x32xf32>
    %cst_101 = arith.constant dense<0.000000e+00> : vector<8x32xf32>
    %220 = tpu.matmul %217, %219, %cst_101 {dimension_numbers = #tpu.dot_dimension_numbers<[1], [0], [0], [1], [0, 0, 1, 1], [], []>} : vector<8x32xf32>, vector<32x32xf32>, vector<8x32xf32> -> vector<8x32xf32>
    %c1_102 = arith.constant 1 : index
    %c0_103 = arith.constant 0 : index
    %c0_104 = arith.constant 0 : index
    %221 = vector.load %arg3[%c1_102, %c0_103, %c0_104] : memref<2x1x32xf32, #tpu.memory_space<vmem>>, vector<1x1x32xf32>
    %222 = vector.shape_cast %221 : vector<1x1x32xf32> to vector<1x32xf32>
    %223 = vector.broadcast %222 : vector<1x32xf32> to vector<8x32xf32>
    %224 = arith.addf %220, %223 : vector<8x32xf32>
    %225 = arith.addf %100, %224 : vector<8x32xf32>
    %cst_105 = arith.constant dense<0.000000e+00> : vector<8xf32>
    %226 = vector.multi_reduction <add>, %225, %cst_105 [1] : vector<8x32xf32> to vector<8xf32>
    %227 = vector.shape_cast %226 : vector<8xf32> to vector<8x1xf32>
    %cst_106 = arith.constant 3.200000e+01 : f32
    %228 = vector.broadcast %cst_106 : f32 to vector<8x1xf32>
    %229 = arith.divf %227, %228 : vector<8x1xf32>
    %230 = vector.broadcast %229 : vector<8x1xf32> to vector<8x32xf32>
    %231 = arith.subf %225, %230 : vector<8x32xf32>
    %232 = arith.mulf %231, %231 : vector<8x32xf32>
    %cst_107 = arith.constant dense<0.000000e+00> : vector<8xf32>
    %233 = vector.multi_reduction <add>, %232, %cst_107 [1] : vector<8x32xf32> to vector<8xf32>
    %234 = vector.shape_cast %233 : vector<8xf32> to vector<8x1xf32>
    %cst_108 = arith.constant 3.200000e+01 : f32
    %235 = vector.broadcast %cst_108 : f32 to vector<8x1xf32>
    %236 = arith.divf %234, %235 : vector<8x1xf32>
    %237 = vector.broadcast %229 : vector<8x1xf32> to vector<8x32xf32>
    %238 = arith.subf %225, %237 : vector<8x32xf32>
    %cst_109 = arith.constant 9.99999974E-6 : f32
    %239 = vector.broadcast %cst_109 : f32 to vector<8x1xf32>
    %240 = arith.addf %236, %239 : vector<8x1xf32>
    %241 = math.rsqrt %240 : vector<8x1xf32>
    %242 = vector.broadcast %241 : vector<8x1xf32> to vector<8x32xf32>
    %243 = arith.mulf %238, %242 : vector<8x32xf32>
    %c1_110 = arith.constant 1 : index
    %c0_111 = arith.constant 0 : index
    %c0_112 = arith.constant 0 : index
    %244 = vector.load %arg4[%c1_110, %c0_111, %c0_112] : memref<2x32x128xf32, #tpu.memory_space<vmem>>, vector<1x32x128xf32>
    %245 = vector.shape_cast %244 : vector<1x32x128xf32> to vector<32x128xf32>
    %cst_113 = arith.constant dense<0.000000e+00> : vector<8x128xf32>
    %246 = tpu.matmul %243, %245, %cst_113 {dimension_numbers = #tpu.dot_dimension_numbers<[1], [0], [0], [1], [0, 0, 1, 1], [], []>} : vector<8x32xf32>, vector<32x128xf32>, vector<8x128xf32> -> vector<8x128xf32>
    %c1_114 = arith.constant 1 : index
    %c0_115 = arith.constant 0 : index
    %c0_116 = arith.constant 0 : index
    %247 = vector.load %arg5[%c1_114, %c0_115, %c0_116] : memref<2x1x128xf32, #tpu.memory_space<vmem>>, vector<1x1x128xf32>
    %248 = vector.shape_cast %247 : vector<1x1x128xf32> to vector<1x128xf32>
    %249 = vector.broadcast %248 : vector<1x128xf32> to vector<8x128xf32>
    %250 = arith.addf %246, %249 : vector<8x128xf32>
    %cst_117 = arith.constant 5.000000e-01 : f32
    %251 = vector.broadcast %cst_117 : f32 to vector<8x128xf32>
    %252 = arith.mulf %251, %250 : vector<8x128xf32>
    %cst_118 = arith.constant 0.707106769 : f32
    %253 = vector.broadcast %cst_118 : f32 to vector<8x128xf32>
    %254 = arith.mulf %250, %253 : vector<8x128xf32>
    %255 = math.absf %254 : vector<8x128xf32>
    %cst_119 = arith.constant 0.327591091 : f32
    %256 = vector.broadcast %cst_119 : f32 to vector<8x128xf32>
    %257 = arith.mulf %256, %255 : vector<8x128xf32>
    %cst_120 = arith.constant 1.000000e+00 : f32
    %258 = vector.broadcast %cst_120 : f32 to vector<8x128xf32>
    %259 = arith.addf %258, %257 : vector<8x128xf32>
    %cst_121 = arith.constant 1.000000e+00 : f32
    %260 = vector.broadcast %cst_121 : f32 to vector<8x128xf32>
    %261 = arith.divf %260, %259 : vector<8x128xf32>
    %cst_122 = arith.constant 1.06140542 : f32
    %262 = vector.broadcast %cst_122 : f32 to vector<8x128xf32>
    %263 = arith.mulf %262, %261 : vector<8x128xf32>
    %cst_123 = arith.constant -1.45315206 : f32
    %264 = vector.broadcast %cst_123 : f32 to vector<8x128xf32>
    %265 = arith.addf %263, %264 : vector<8x128xf32>
    %266 = arith.mulf %265, %261 : vector<8x128xf32>
    %cst_124 = arith.constant 1.42141378 : f32
    %267 = vector.broadcast %cst_124 : f32 to vector<8x128xf32>
    %268 = arith.addf %266, %267 : vector<8x128xf32>
    %269 = arith.mulf %268, %261 : vector<8x128xf32>
    %cst_125 = arith.constant -0.284496725 : f32
    %270 = vector.broadcast %cst_125 : f32 to vector<8x128xf32>
    %271 = arith.addf %269, %270 : vector<8x128xf32>
    %272 = arith.mulf %271, %261 : vector<8x128xf32>
    %cst_126 = arith.constant 0.254829586 : f32
    %273 = vector.broadcast %cst_126 : f32 to vector<8x128xf32>
    %274 = arith.addf %272, %273 : vector<8x128xf32>
    %275 = arith.mulf %274, %261 : vector<8x128xf32>
    %cst_127 = arith.constant 0.000000e+00 : f32
    %276 = vector.broadcast %cst_127 : f32 to vector<8x128xf32>
    %277 = arith.subf %276, %255 : vector<8x128xf32>
    %278 = arith.mulf %277, %255 : vector<8x128xf32>
    %279 = math.exp %278 : vector<8x128xf32>
    %280 = arith.mulf %275, %279 : vector<8x128xf32>
    %cst_128 = arith.constant 1.000000e+00 : f32
    %281 = vector.broadcast %cst_128 : f32 to vector<8x128xf32>
    %282 = arith.subf %281, %280 : vector<8x128xf32>
    %cst_129 = arith.constant 0.000000e+00 : f32
    %283 = vector.broadcast %cst_129 : f32 to vector<8x128xf32>
    %284 = arith.cmpf oge, %254, %283 : vector<8x128xf32>
    %cst_130 = arith.constant 0.000000e+00 : f32
    %285 = vector.broadcast %cst_130 : f32 to vector<8x128xf32>
    %286 = arith.subf %285, %282 : vector<8x128xf32>
    %287 = arith.select %284, %282, %286 : vector<8x128xi1>, vector<8x128xf32>
    %cst_131 = arith.constant 1.000000e+00 : f32
    %288 = vector.broadcast %cst_131 : f32 to vector<8x128xf32>
    %289 = arith.addf %288, %287 : vector<8x128xf32>
    %290 = arith.mulf %252, %289 : vector<8x128xf32>
    %c1_132 = arith.constant 1 : index
    %c0_133 = arith.constant 0 : index
    %c0_134 = arith.constant 0 : index
    %291 = vector.load %arg6[%c1_132, %c0_133, %c0_134] : memref<2x128x32xf32, #tpu.memory_space<vmem>>, vector<1x128x32xf32>
    %292 = vector.shape_cast %291 : vector<1x128x32xf32> to vector<128x32xf32>
    %cst_135 = arith.constant dense<0.000000e+00> : vector<8x32xf32>
    %293 = tpu.matmul %290, %292, %cst_135 {dimension_numbers = #tpu.dot_dimension_numbers<[1], [0], [0], [1], [0, 0, 1, 1], [], []>} : vector<8x128xf32>, vector<128x32xf32>, vector<8x32xf32> -> vector<8x32xf32>
    %c1_136 = arith.constant 1 : index
    %c0_137 = arith.constant 0 : index
    %c0_138 = arith.constant 0 : index
    %294 = vector.load %arg7[%c1_136, %c0_137, %c0_138] : memref<2x1x32xf32, #tpu.memory_space<vmem>>, vector<1x1x32xf32>
    %295 = vector.shape_cast %294 : vector<1x1x32xf32> to vector<1x32xf32>
    %296 = vector.broadcast %295 : vector<1x32xf32> to vector<8x32xf32>
    %297 = arith.addf %293, %296 : vector<8x32xf32>
    %298 = arith.addf %225, %297 : vector<8x32xf32>
    %cst_139 = arith.constant dense<0.000000e+00> : vector<8xf32>
    %299 = vector.multi_reduction <add>, %298, %cst_139 [1] : vector<8x32xf32> to vector<8xf32>
    %300 = vector.shape_cast %299 : vector<8xf32> to vector<8x1xf32>
    %cst_140 = arith.constant 3.200000e+01 : f32
    %301 = vector.broadcast %cst_140 : f32 to vector<8x1xf32>
    %302 = arith.divf %300, %301 : vector<8x1xf32>
    %303 = vector.broadcast %302 : vector<8x1xf32> to vector<8x32xf32>
    %304 = arith.subf %298, %303 : vector<8x32xf32>
    %305 = arith.mulf %304, %304 : vector<8x32xf32>
    %cst_141 = arith.constant dense<0.000000e+00> : vector<8xf32>
    %306 = vector.multi_reduction <add>, %305, %cst_141 [1] : vector<8x32xf32> to vector<8xf32>
    %307 = vector.shape_cast %306 : vector<8xf32> to vector<8x1xf32>
    %cst_142 = arith.constant 3.200000e+01 : f32
    %308 = vector.broadcast %cst_142 : f32 to vector<8x1xf32>
    %309 = arith.divf %307, %308 : vector<8x1xf32>
    %310 = vector.broadcast %302 : vector<8x1xf32> to vector<8x32xf32>
    %311 = arith.subf %298, %310 : vector<8x32xf32>
    %cst_143 = arith.constant 9.99999974E-6 : f32
    %312 = vector.broadcast %cst_143 : f32 to vector<8x1xf32>
    %313 = arith.addf %309, %312 : vector<8x1xf32>
    %314 = math.rsqrt %313 : vector<8x1xf32>
    %315 = vector.broadcast %314 : vector<8x1xf32> to vector<8x32xf32>
    %316 = arith.mulf %311, %315 : vector<8x32xf32>
    %c1_144 = arith.constant 1 : index
    %c0_145 = arith.constant 0 : index
    %c0_146 = arith.constant 0 : index
    %317 = vector.load %arg2[%c1_144, %c0_145, %c0_146] : memref<2x32x32xf32, #tpu.memory_space<vmem>>, vector<1x32x32xf32>
    %318 = vector.shape_cast %317 : vector<1x32x32xf32> to vector<32x32xf32>
    %cst_147 = arith.constant dense<0.000000e+00> : vector<8x32xf32>
    %319 = tpu.matmul %316, %318, %cst_147 {dimension_numbers = #tpu.dot_dimension_numbers<[1], [0], [0], [1], [0, 0, 1, 1], [], []>} : vector<8x32xf32>, vector<32x32xf32>, vector<8x32xf32> -> vector<8x32xf32>
    %c1_148 = arith.constant 1 : index
    %c0_149 = arith.constant 0 : index
    %c0_150 = arith.constant 0 : index
    %320 = vector.load %arg3[%c1_148, %c0_149, %c0_150] : memref<2x1x32xf32, #tpu.memory_space<vmem>>, vector<1x1x32xf32>
    %321 = vector.shape_cast %320 : vector<1x1x32xf32> to vector<1x32xf32>
    %322 = vector.broadcast %321 : vector<1x32xf32> to vector<8x32xf32>
    %323 = arith.addf %319, %322 : vector<8x32xf32>
    %324 = arith.addf %199, %323 : vector<8x32xf32>
    %cst_151 = arith.constant dense<0.000000e+00> : vector<8xf32>
    %325 = vector.multi_reduction <add>, %324, %cst_151 [1] : vector<8x32xf32> to vector<8xf32>
    %326 = vector.shape_cast %325 : vector<8xf32> to vector<8x1xf32>
    %cst_152 = arith.constant 3.200000e+01 : f32
    %327 = vector.broadcast %cst_152 : f32 to vector<8x1xf32>
    %328 = arith.divf %326, %327 : vector<8x1xf32>
    %329 = vector.broadcast %328 : vector<8x1xf32> to vector<8x32xf32>
    %330 = arith.subf %324, %329 : vector<8x32xf32>
    %331 = arith.mulf %330, %330 : vector<8x32xf32>
    %cst_153 = arith.constant dense<0.000000e+00> : vector<8xf32>
    %332 = vector.multi_reduction <add>, %331, %cst_153 [1] : vector<8x32xf32> to vector<8xf32>
    %333 = vector.shape_cast %332 : vector<8xf32> to vector<8x1xf32>
    %cst_154 = arith.constant 3.200000e+01 : f32
    %334 = vector.broadcast %cst_154 : f32 to vector<8x1xf32>
    %335 = arith.divf %333, %334 : vector<8x1xf32>
    %336 = vector.broadcast %328 : vector<8x1xf32> to vector<8x32xf32>
    %337 = arith.subf %324, %336 : vector<8x32xf32>
    %cst_155 = arith.constant 9.99999974E-6 : f32
    %338 = vector.broadcast %cst_155 : f32 to vector<8x1xf32>
    %339 = arith.addf %335, %338 : vector<8x1xf32>
    %340 = math.rsqrt %339 : vector<8x1xf32>
    %341 = vector.broadcast %340 : vector<8x1xf32> to vector<8x32xf32>
    %342 = arith.mulf %337, %341 : vector<8x32xf32>
    %c1_156 = arith.constant 1 : index
    %c0_157 = arith.constant 0 : index
    %c0_158 = arith.constant 0 : index
    %343 = vector.load %arg4[%c1_156, %c0_157, %c0_158] : memref<2x32x128xf32, #tpu.memory_space<vmem>>, vector<1x32x128xf32>
    %344 = vector.shape_cast %343 : vector<1x32x128xf32> to vector<32x128xf32>
    %cst_159 = arith.constant dense<0.000000e+00> : vector<8x128xf32>
    %345 = tpu.matmul %342, %344, %cst_159 {dimension_numbers = #tpu.dot_dimension_numbers<[1], [0], [0], [1], [0, 0, 1, 1], [], []>} : vector<8x32xf32>, vector<32x128xf32>, vector<8x128xf32> -> vector<8x128xf32>
    %c1_160 = arith.constant 1 : index
    %c0_161 = arith.constant 0 : index
    %c0_162 = arith.constant 0 : index
    %346 = vector.load %arg5[%c1_160, %c0_161, %c0_162] : memref<2x1x128xf32, #tpu.memory_space<vmem>>, vector<1x1x128xf32>
    %347 = vector.shape_cast %346 : vector<1x1x128xf32> to vector<1x128xf32>
    %348 = vector.broadcast %347 : vector<1x128xf32> to vector<8x128xf32>
    %349 = arith.addf %345, %348 : vector<8x128xf32>
    %cst_163 = arith.constant 5.000000e-01 : f32
    %350 = vector.broadcast %cst_163 : f32 to vector<8x128xf32>
    %351 = arith.mulf %350, %349 : vector<8x128xf32>
    %cst_164 = arith.constant 0.707106769 : f32
    %352 = vector.broadcast %cst_164 : f32 to vector<8x128xf32>
    %353 = arith.mulf %349, %352 : vector<8x128xf32>
    %354 = math.absf %353 : vector<8x128xf32>
    %cst_165 = arith.constant 0.327591091 : f32
    %355 = vector.broadcast %cst_165 : f32 to vector<8x128xf32>
    %356 = arith.mulf %355, %354 : vector<8x128xf32>
    %cst_166 = arith.constant 1.000000e+00 : f32
    %357 = vector.broadcast %cst_166 : f32 to vector<8x128xf32>
    %358 = arith.addf %357, %356 : vector<8x128xf32>
    %cst_167 = arith.constant 1.000000e+00 : f32
    %359 = vector.broadcast %cst_167 : f32 to vector<8x128xf32>
    %360 = arith.divf %359, %358 : vector<8x128xf32>
    %cst_168 = arith.constant 1.06140542 : f32
    %361 = vector.broadcast %cst_168 : f32 to vector<8x128xf32>
    %362 = arith.mulf %361, %360 : vector<8x128xf32>
    %cst_169 = arith.constant -1.45315206 : f32
    %363 = vector.broadcast %cst_169 : f32 to vector<8x128xf32>
    %364 = arith.addf %362, %363 : vector<8x128xf32>
    %365 = arith.mulf %364, %360 : vector<8x128xf32>
    %cst_170 = arith.constant 1.42141378 : f32
    %366 = vector.broadcast %cst_170 : f32 to vector<8x128xf32>
    %367 = arith.addf %365, %366 : vector<8x128xf32>
    %368 = arith.mulf %367, %360 : vector<8x128xf32>
    %cst_171 = arith.constant -0.284496725 : f32
    %369 = vector.broadcast %cst_171 : f32 to vector<8x128xf32>
    %370 = arith.addf %368, %369 : vector<8x128xf32>
    %371 = arith.mulf %370, %360 : vector<8x128xf32>
    %cst_172 = arith.constant 0.254829586 : f32
    %372 = vector.broadcast %cst_172 : f32 to vector<8x128xf32>
    %373 = arith.addf %371, %372 : vector<8x128xf32>
    %374 = arith.mulf %373, %360 : vector<8x128xf32>
    %cst_173 = arith.constant 0.000000e+00 : f32
    %375 = vector.broadcast %cst_173 : f32 to vector<8x128xf32>
    %376 = arith.subf %375, %354 : vector<8x128xf32>
    %377 = arith.mulf %376, %354 : vector<8x128xf32>
    %378 = math.exp %377 : vector<8x128xf32>
    %379 = arith.mulf %374, %378 : vector<8x128xf32>
    %cst_174 = arith.constant 1.000000e+00 : f32
    %380 = vector.broadcast %cst_174 : f32 to vector<8x128xf32>
    %381 = arith.subf %380, %379 : vector<8x128xf32>
    %cst_175 = arith.constant 0.000000e+00 : f32
    %382 = vector.broadcast %cst_175 : f32 to vector<8x128xf32>
    %383 = arith.cmpf oge, %353, %382 : vector<8x128xf32>
    %cst_176 = arith.constant 0.000000e+00 : f32
    %384 = vector.broadcast %cst_176 : f32 to vector<8x128xf32>
    %385 = arith.subf %384, %381 : vector<8x128xf32>
    %386 = arith.select %383, %381, %385 : vector<8x128xi1>, vector<8x128xf32>
    %cst_177 = arith.constant 1.000000e+00 : f32
    %387 = vector.broadcast %cst_177 : f32 to vector<8x128xf32>
    %388 = arith.addf %387, %386 : vector<8x128xf32>
    %389 = arith.mulf %351, %388 : vector<8x128xf32>
    %c1_178 = arith.constant 1 : index
    %c0_179 = arith.constant 0 : index
    %c0_180 = arith.constant 0 : index
    %390 = vector.load %arg6[%c1_178, %c0_179, %c0_180] : memref<2x128x32xf32, #tpu.memory_space<vmem>>, vector<1x128x32xf32>
    %391 = vector.shape_cast %390 : vector<1x128x32xf32> to vector<128x32xf32>
    %cst_181 = arith.constant dense<0.000000e+00> : vector<8x32xf32>
    %392 = tpu.matmul %389, %391, %cst_181 {dimension_numbers = #tpu.dot_dimension_numbers<[1], [0], [0], [1], [0, 0, 1, 1], [], []>} : vector<8x128xf32>, vector<128x32xf32>, vector<8x32xf32> -> vector<8x32xf32>
    %c1_182 = arith.constant 1 : index
    %c0_183 = arith.constant 0 : index
    %c0_184 = arith.constant 0 : index
    %393 = vector.load %arg7[%c1_182, %c0_183, %c0_184] : memref<2x1x32xf32, #tpu.memory_space<vmem>>, vector<1x1x32xf32>
    %394 = vector.shape_cast %393 : vector<1x1x32xf32> to vector<1x32xf32>
    %395 = vector.broadcast %394 : vector<1x32xf32> to vector<8x32xf32>
    %396 = arith.addf %392, %395 : vector<8x32xf32>
    %397 = arith.addf %324, %396 : vector<8x32xf32>
    %c0_185 = arith.constant 0 : index
    %c0_186 = arith.constant 0 : index
    %398 = vector.load %arg8[%c0_185, %c0_186] : memref<32x32xf32, #tpu.memory_space<vmem>>, vector<32x32xf32>
    %cst_187 = arith.constant dense<0.000000e+00> : vector<8x32xf32>
    %399 = tpu.matmul %397, %398, %cst_187 {dimension_numbers = #tpu.dot_dimension_numbers<[1], [0], [0], [1], [0, 0, 1, 1], [], []>} : vector<8x32xf32>, vector<32x32xf32>, vector<8x32xf32> -> vector<8x32xf32>
    %c0_188 = arith.constant 0 : index
    %c0_189 = arith.constant 0 : index
    %400 = vector.load %arg9[%c0_188, %c0_189] : memref<32x32xf32, #tpu.memory_space<vmem>>, vector<32x32xf32>
    %cst_190 = arith.constant dense<0.000000e+00> : vector<8x32xf32>
    %401 = tpu.matmul %298, %400, %cst_190 {dimension_numbers = #tpu.dot_dimension_numbers<[1], [0], [0], [1], [0, 0, 1, 1], [], []>} : vector<8x32xf32>, vector<32x32xf32>, vector<8x32xf32> -> vector<8x32xf32>
    %402 = arith.addf %399, %401 : vector<8x32xf32>
    %c0_191 = arith.constant 0 : index
    %c0_192 = arith.constant 0 : index
    %403 = vector.load %arg10[%c0_191, %c0_192] : memref<1x32xf32, #tpu.memory_space<vmem>>, vector<1x32xf32>
    %404 = vector.broadcast %403 : vector<1x32xf32> to vector<8x32xf32>
    %405 = arith.addf %402, %404 : vector<8x32xf32>
    %cst_193 = arith.constant 0.000000e+00 : f32
    %406 = vector.broadcast %cst_193 : f32 to vector<8x32xf32>
    %407 = arith.maximumf %405, %406 : vector<8x32xf32>
    %c0_194 = arith.constant 0 : index
    %c0_195 = arith.constant 0 : index
    %408 = vector.load %arg11[%c0_194, %c0_195] : memref<32x128xf32, #tpu.memory_space<vmem>>, vector<32x128xf32>
    %cst_196 = arith.constant dense<0.000000e+00> : vector<8x128xf32>
    %409 = tpu.matmul %407, %408, %cst_196 {dimension_numbers = #tpu.dot_dimension_numbers<[1], [0], [0], [1], [0, 0, 1, 1], [], []>} : vector<8x32xf32>, vector<32x128xf32>, vector<8x128xf32> -> vector<8x128xf32>
    %c0_197 = arith.constant 0 : index
    %c0_198 = arith.constant 0 : index
    %410 = vector.load %arg12[%c0_197, %c0_198] : memref<1x128xf32, #tpu.memory_space<vmem>>, vector<1x128xf32>
    %411 = vector.broadcast %410 : vector<1x128xf32> to vector<8x128xf32>
    %412 = arith.addf %409, %411 : vector<8x128xf32>
    %cst_199 = arith.constant 0.000000e+00 : f32
    %413 = vector.broadcast %cst_199 : f32 to vector<8x128xf32>
    %414 = arith.subf %413, %412 : vector<8x128xf32>
    %415 = math.exp %414 : vector<8x128xf32>
    %cst_200 = arith.constant 1.000000e+00 : f32
    %416 = vector.broadcast %cst_200 : f32 to vector<8x128xf32>
    %417 = arith.addf %416, %415 : vector<8x128xf32>
    %cst_201 = arith.constant 1.000000e+00 : f32
    %418 = vector.broadcast %cst_201 : f32 to vector<8x128xf32>
    %419 = arith.divf %418, %417 : vector<8x128xf32>
    %c0_202 = arith.constant 0 : index
    %c0_203 = arith.constant 0 : index
    %420 = vector.load %arg13[%c0_202, %c0_203] : memref<8x128xf32, #tpu.memory_space<vmem>>, vector<8x128xf32>
    tpu.vector_store %arg13[%c0_202, %c0_203], %419 {strides = array<i32>} : memref<8x128xf32, #tpu.memory_space<vmem>>, vector<8x128xf32>,
    return
  }
}

</mosaic_0001>

<bundles_post_ra>
// kernel: tpu_custom_call.1
= control target key start
LH: loop header
LB: loop body
LE: loop exit
PB: predicated region body
PF: predicated region fallthrough
CT: control target
= control target key end

     0   :  { %vm47_vm0 = vcmask 261120   ;;  %s2702_s0 = inlined_call_operand.vmem [shape: f32[8,32], index: 0, kind: input, shape index: {}]   ;;  %s2703_s1 = inlined_call_operand.vmem [shape: f32[8,32], index: 1, kind: input, shape index: {}]   ;;  %s2704_s2 = inlined_call_operand.vmem [shape: f32[2,32,32], index: 2, kind: input, shape index: {}]   ;;  %s2705_s3 = inlined_call_operand.vmem [shape: f32[2,1,32], index: 3, kind: input, shape index: {}]   ;;  %s2706_s4 = inlined_call_operand.vmem [shape: f32[2,32,128], index: 4, kind: input, shape index: {}]   ;;  %s2707_s5 = inlined_call_operand.vmem [shape: f32[2,1,128], index: 5, kind: input, shape index: {}]   ;;  %s2708_s6 = inlined_call_operand.vmem [shape: f32[2,128,32], index: 6, kind: input, shape index: {}]   ;;  %s2709_s7 = inlined_call_operand.vmem [shape: f32[2,1,32], index: 7, kind: input, shape index: {}]   ;;  %s2710_s8 = inlined_call_operand.vmem [shape: f32[32,32], index: 8, kind: input, shape index: {}]   ;;  %s2711_s9 = inlined_call_operand.vmem [shape: f32[32,32], index: 9, kind: input, shape index: {}]   ;;  %s2712_s10 = inlined_call_operand.vmem [shape: f32[1,32], index: 10, kind: input, shape index: {}]   ;;  %s2713_s11 = inlined_call_operand.vmem [shape: f32[32,128], index: 11, kind: input, shape index: {}]   ;;  %s2714_s12 = inlined_call_operand.vmem [shape: f32[1,128], index: 12, kind: input, shape index: {}]   ;;  %s2715_s13 = inlined_call_operand.hbm [shape: f32[8,128], index: 13, kind: output, shape index: {}]  }
   0x1   :  { %v2230_v0 = vld [vmem:[%s2702_s0] sm:$0xff] }
   0x2   :  { %18 = vsyncpa [#allocation3], 0  ;;  %v48_v1 = vsel %vm47_vm0, %v2230_v0, 0.0  ;;  %v62_v7 = vld [vmem:[%s2704_s2] sm:$0xff]  ;;  %v63_v8 = vld [vmem:[%s2704_s2 + $0x8] sm:$0xff]  ;;  %v2153_v10 = vmov 0.0|0.0  }
   0x3   :  { %49 = vadd.xlane.f32.xlu0 %v48_v1  ;;  %v64_v9 = vld [vmem:[%s2704_s2 + $0x10] sm:$0xff]  ;;  %1927 = vmatprep.subr.bf16.mxu0 %v2153_v10  ;;  %v1928_v11 = vpack.c.bf16 %v63_v8, %v62_v7  ;;  %v65_v12 = vld [vmem:[%s2704_s2 + $0x18] sm:$0xff]  ;;  %vm2154_vm1 = vmmov 0   ;;  %v2155_v13 = vmov 0.0   ;;  %v2262_v20 = vld [vmem:[%s2705_s3] ss:$0 sm:$0xff] }
   0x4   :  { %1674 = vmatprep.mubr.msk.f32.mxu0 %vm2154_vm1, %v2155_v13  ;;  %1933 = vmatprep.subr.bf16.mxu1 %v2153_v10  ;;  %v1931_v14 = vpack.c.bf16 %v65_v12, %v64_v9  ;;  %v46_v21 = vld [vmem:[%s2703_s1] sm:$0xff]  ;;  %v161_v33 = vld [vmem:[%s2706_s4 + $0x8] sm:$0xff]  ;;  %v162_v34 = vld [vmem:[%s2706_s4 + $0x10] sm:$0xff] }
   0x5   :  { %1685 = vmatprep.mubr.msk.f32.mxu1 %vm2154_vm1, %v2155_v13  ;;  %1929 = vmatpush3.bf16.msra.mxu0 %v1928_v11  ;;  %v160_v32 = vld [vmem:[%s2706_s4] sm:$0xff]  ;;  %v163_v36 = vld [vmem:[%s2706_s4 + $0x18] sm:$0xff]  ;;  %v272_v44 = vld [vmem:[%s2708_s6 + $0x8] sm:$0xff] }
   0x6   :  { %1930 = vmatprep.subr.bf16.mxu0 %v2153_v10  ;;  %v2283_v35 = vpack.c.bf16 %v161_v33, %v160_v32  ;;  %v2289_v37 = vpack.c.bf16 %v163_v36, %v162_v34  ;;  %v271_v43 = vld [vmem:[%s2708_s6] sm:$0xff]  ;;  %v273_v46 = vld [vmem:[%s2708_s6 + $0x10] sm:$0xff]  ;;  %v274_v47 = vld [vmem:[%s2708_s6 + $0x18] sm:$0xff] }
   0x7   :  { %v2305_v45 = vpack.c.bf16 %v272_v44, %v271_v43  ;;  %v2315_v48 = vpack.c.bf16 %v274_v47, %v273_v46  ;;  %v275_v49 = vld [vmem:[%s2708_s6 + $0x20] sm:$0xff]  ;;  %v276_v50 = vld [vmem:[%s2708_s6 + $0x28] sm:$0xff]  ;;  %v277_v52 = vld [vmem:[%s2708_s6 + $0x30] sm:$0xff] }
   0x8   :  { %1935 = vmatpush3.bf16.msra.mxu1 %v2283_v35  ;;  %v2325_v51 = vpack.c.bf16 %v276_v50, %v275_v49  ;;  %v278_v53 = vld [vmem:[%s2708_s6 + $0x38] sm:$0xff]  ;;  %v279_v55 = vld [vmem:[%s2708_s6 + $0x40] sm:$0xff]  ;;  %v280_v56 = vld [vmem:[%s2708_s6 + $0x48] sm:$0xff] }
   0x9   :  { %1932 = vmatpush3.bf16.msra.mxu0 %v1931_v14  ;;  %1936 = vmatprep.subr.bf16.mxu1 %v2153_v10  ;;  %v2335_v54 = vpack.c.bf16 %v278_v53, %v277_v52  ;;  %v2345_v57 = vpack.c.bf16 %v280_v56, %v279_v55  ;;  %v281_v58 = vld [vmem:[%s2708_s6 + $0x50] sm:$0xff]  ;;  %v282_v59 = vld [vmem:[%s2708_s6 + $0x58] sm:$0xff]  ;;  %v283_v61 = vld [vmem:[%s2708_s6 + $0x60] sm:$0xff] }
   0xa   :  { %1939 = vmatprep.subr.bf16.mxu0 %v2153_v10  ;;  %v2355_v60 = vpack.c.bf16 %v282_v59, %v281_v58  ;;  %v284_v62 = vld [vmem:[%s2708_s6 + $0x68] sm:$0xff]  ;;  %v285_v1 = vld [vmem:[%s2708_s6 + $0x70] sm:$0xff] }
   0xb   :  { %v2365_v63 = vpack.c.bf16 %v284_v62, %v283_v61 }
   0xc   :  { %1938 = vmatpush3.bf16.msra.mxu1 %v2289_v37 }
   0xd   :  { %1963 = vmatprep.subr.bf16.mxu1 %v2153_v10 }
  0x90   :  { %v50_v2 = vpop.xlane.xlu0 %49 }
  0x91   :  { %v52_v3 = vmul.f32 0.03125, %v50_v2  ;;  %v286_v2 = vld [vmem:[%s2708_s6 + $0x78] sm:$0xff] }
  0x93   :  { %v53_v4 = vsub.f32 %v2230_v0, %v52_v3  ;;  %v2375_v3 = vpack.c.bf16 %v286_v2, %v285_v1 }
  0x95   :  { %v54_v5 = vmul.f32 %v53_v4, %v53_v4 }
  0x97   :  { %v55_v6 = vsel %vm47_vm0, %v54_v5, 0.0 }
  0x98   :  { %56 = vadd.xlane.f32.xlu0 %v55_v6 }
 0x125   :  { %v57_v15 = vpop.xlane.xlu0 %56 }
 0x126   :  { %v58_v16 = vmul.f32 0.03125, %v57_v15 }
 0x128   :  { %v59_v17 = vadd.f32 1e-05, %v58_v16 }
 0x12a   :  { %2093 = vrsqrt.f32 %v59_v17 }
 0x134   :  { %v2094_v18 = vpop.eup %2093 }
 0x135   :  { %v61_v19 = vmul.f32 %v2094_v18, %v53_v4  ;;  %v2382_v4 = vld [vmem:[%s2707_s5] ss:$0 sm:$0xff] }
 0x137   :  { %1675 = vmatmul.mubr.msk.f32.vlgmr.msra.gmra.mrb[0].mxu0 %vm47_vm0, %v61_v19 }
 0x138   :  { %1720 = vmatprep.mubr.msk.f32.mxu0 %vm2154_vm1, %v2155_v13  ;;  %1941 = vmatpush3.bf16.msra.mxu0 %v2305_v45 }
 0x139   :  { %1942 = vmatprep.subr.bf16.mxu0 %v2153_v10 }
 0x13c   :  { %1944 = vmatpush3.bf16.msra.mxu0 %v2315_v48 }
 0x13d   :  { %1945 = vmatprep.subr.bf16.mxu0 %v2153_v10 }
 0x140   :  { %1947 = vmatpush3.bf16.msra.mxu0 %v2325_v51 }
 0x141   :  { %1948 = vmatprep.subr.bf16.mxu0 %v2153_v10 }
 0x144   :  { %1950 = vmatpush3.bf16.msra.mxu0 %v2335_v54 }
 0x145   :  { %1951 = vmatprep.subr.bf16.mxu0 %v2153_v10 }
 0x148   :  { %1953 = vmatpush3.bf16.msra.mxu0 %v2345_v57 }
 0x149   :  { %1954 = vmatprep.subr.bf16.mxu0 %v2153_v10 }
 0x14c   :  { %1956 = vmatpush3.bf16.msra.mxu0 %v2355_v60 }
 0x14d   :  { %1957 = vmatprep.subr.bf16.mxu0 %v2153_v10 }
 0x150   :  { %1959 = vmatpush3.bf16.msra.mxu0 %v2365_v63 }
 0x151   :  { %1960 = vmatprep.subr.bf16.mxu0 %v2153_v10 }
 0x154   :  { %1962 = vmatpush3.bf16.msra.mxu0 %v2375_v3 }
 0x155   :  { %1999 = vmatprep.subr.bf16.mxu0 %v2153_v10 }
 0x20a   :  { %v142_v22 = vpop.f32.mrb[0].mxu0 }
 0x20b   :  { %v143_v23 = vadd.f32 %v2262_v20, %v142_v22  ;;  %v1676_v24 = vpop.f32.mrb[1].mxu0 }
 0x20d   :  { %v2268_v25 = vadd.f32 %v143_v23, %v46_v21 }
 0x20f   :  { %v147_v26 = vsel %vm47_vm0, %v2268_v25, 0.0 }
 0x210   :  { %148 = vadd.xlane.f32.xlu1 %v147_v26 }
 0x29d   :  { %v149_v27 = vpop.xlane.xlu1 %148 }
 0x29e   :  { %v150_v28 = vmul.f32 0.03125, %v149_v27 }
 0x2a0   :  { %v151_v29 = vsub.f32 %v2268_v25, %v150_v28 }
 0x2a2   :  { %v152_v30 = vmul.f32 %v151_v29, %v151_v29 }
 0x2a4   :  { %v153_v31 = vsel %vm47_vm0, %v152_v30, 0.0 }
 0x2a5   :  { %154 = vadd.xlane.f32.xlu1 %v153_v31 }
 0x332   :  { %v155_v38 = vpop.xlane.xlu1 %154 }
 0x333   :  { %v156_v39 = vmul.f32 0.03125, %v155_v38 }
 0x335   :  { %v157_v40 = vadd.f32 1e-05, %v156_v39  ;;  %v2390_v39 = vld [vmem:[%s2709_s7] ss:$0 sm:$0xff] }
 0x337   :  { %2095 = vrsqrt.f32 %v157_v40 }
 0x341   :  { %v2096_v41 = vpop.eup %2095 }
 0x342   :  { %v159_v42 = vmul.f32 %v2096_v41, %v151_v29 }
 0x344   :  { %1686 = vmatmul.mubr.msk.f32.vlgmr.msra.gmra.mrb[0].mxu1 %vm47_vm0, %v159_v42 }
 0x345   :  { %1965 = vmatpush3.bf16.msra.mxu1 %v1928_v11  ;;  %1731 = vmatprep.mubr.msk.f32.mxu1 %vm2154_vm1, %v2155_v13 }
 0x346   :  { %1966 = vmatprep.subr.bf16.mxu1 %v2153_v10 }
 0x349   :  { %1968 = vmatpush3.bf16.msra.mxu1 %v1931_v14 }
 0x34a   :  { %1969 = vmatprep.subr.bf16.mxu1 %v2153_v10 }
 0x417   :  { %v240_v5 = vpop.f32.mrb[0].mxu1 }
 0x418   :  { %v241_v6 = vadd.f32 %v2382_v4, %v240_v5  ;;  %v1687_v7 = vpop.f32.mrb[1].mxu1 }
 0x41a   :  { %v245_v8 = vmul.f32 0.70710677, %v241_v6  ;;  %v244_v34 = vmul.f32 0.5, %v241_v6 }
 0x41c   :  { %v246_v9 = vand.u32 2147483647, %v245_v8  ;;  %vm266_vm2 = vcmp.ge.f32.partialorder %v245_v8, 0.0 }
 0x41e   :  { %v247_v11 = vmul.f32 0.3275911, %v246_v9  ;;  %v260_v14 = vsub.f32 0.0, %v246_v9 }
 0x420   :  { %v248_v12 = vadd.f32 1.0, %v247_v11  ;;  %v261_v16 = vmul.f32 %v260_v14, %v246_v9 }
 0x422   :  { %2097 = vrcp.f32 %v248_v12  ;;  %v262_v19 = vmul.f32 1.442695, %v261_v16 }
 0x424   :  { %2099 = vpow2.f32 %v262_v19 }
 0x42c   :  { %v2098_v15 = vpop.eup %2097 }
 0x42d   :  { %v251_v17 = vmul.f32 1.0614054, %v2098_v15 }
 0x42e   :  { %v2100_v29 = vpop.eup %2099 }
 0x42f   :  { %v252_v18 = vadd.f32 -1.4531521, %v251_v17 }
 0x431   :  { %v253_v21 = vmul.f32 %v2098_v15, %v252_v18 }
 0x433   :  { %v254_v22 = vadd.f32 1.4214138, %v253_v21 }
 0x435   :  { %v255_v23 = vmul.f32 %v2098_v15, %v254_v22 }
 0x437   :  { %v256_v24 = vadd.f32 -0.28449672, %v255_v23 }
 0x439   :  { %v257_v26 = vmul.f32 %v2098_v15, %v256_v24 }
 0x43b   :  { %v258_v27 = vadd.f32 0.2548296, %v257_v26 }
 0x43d   :  { %v259_v28 = vmul.f32 %v2098_v15, %v258_v27 }
 0x43f   :  { %v264_v30 = vmul.f32 %v2100_v29, %v259_v28 }
 0x441   :  { %v265_v31 = vsub.f32 1.0, %v264_v30 }
 0x443   :  { %v267_v32 = vsub.f32 0.0, %v265_v31 }
 0x445   :  { %v268_v33 = vsel %vm266_vm2, %v265_v31, %v267_v32 }
 0x446   :  { %v269_v36 = vadd.f32 1.0, %v268_v33 }
 0x448   :  { %v270_v38 = vmul.f32 %v269_v36, %v244_v34 }
 0x44a   :  { %1721 = vmatmul.mubr.f32.vlgmr.msra.gmra.mrb[2].mxu0 %v270_v38 }
 0x44b   :  { %1788 = vmatprep.mubr.msk.f32.mxu0 %vm2154_vm1, %v2155_v13 }
 0x51d   :  { %v360_v40 = vpop.f32.mrb[2].mxu0 }
 0x51e   :  { %v361_v41 = vadd.f32 %v2390_v39, %v360_v40  ;;  %v1722_v42 = vpop.f32.mrb[3].mxu0 }
 0x520   :  { %v2394_v43 = vadd.f32 %v361_v41, %v2268_v25 }
 0x522   :  { %v365_v44 = vsel %vm47_vm0, %v2394_v43, 0.0 }
 0x523   :  { %366 = vadd.xlane.f32.xlu0 %v365_v44 }
 0x5b0   :  { %v367_v46 = vpop.xlane.xlu0 %366 }
 0x5b1   :  { %v368_v47 = vmul.f32 0.03125, %v367_v46 }
 0x5b3   :  { %v369_v49 = vsub.f32 %v2394_v43, %v368_v47 }
 0x5b5   :  { %v370_v50 = vmul.f32 %v369_v49, %v369_v49 }
 0x5b7   :  { %v371_v52 = vsel %vm47_vm0, %v370_v50, 0.0  ;;  %v1505_v50 = vld [vmem:[%s2704_s2 + $0x28] sm:$0xff] }
 0x5b8   :  { %372 = vadd.xlane.f32.xlu1 %v371_v52  ;;  %v1506_v52 = vld [vmem:[%s2704_s2 + $0x30] sm:$0xff] }
 0x645   :  { %v373_v53 = vpop.xlane.xlu1 %372 }
 0x646   :  { %v374_v55 = vmul.f32 0.03125, %v373_v53 }
 0x648   :  { %v375_v56 = vadd.f32 1e-05, %v374_v55  ;;  %v1507_v55 = vld [vmem:[%s2704_s2 + $0x38] sm:$0xff] }
 0x64a   :  { %2101 = vrsqrt.f32 %v375_v56  ;;  %v2003_v56 = vpack.c.bf16 %v1507_v55, %v1506_v52 }
 0x654   :  { %v2102_v58 = vpop.eup %2101 }
 0x655   :  { %v377_v59 = vmul.f32 %v2102_v58, %v369_v49 }
 0x657   :  { %1732 = vmatmul.mubr.msk.f32.vlgmr.msra.gmra.mrb[2].mxu1 %vm47_vm0, %v377_v59 }
 0x658   :  { %1971 = vmatpush3.bf16.msra.mxu1 %v2283_v35  ;;  %1742 = vmatprep.mubr.msk.f32.mxu1 %vm2154_vm1, %v2155_v13 }
 0x659   :  { %1972 = vmatprep.subr.bf16.mxu1 %v2153_v10 }
 0x65c   :  { %1974 = vmatpush3.bf16.msra.mxu1 %v2289_v37 }
 0x65d   :  { %1975 = vmatprep.subr.bf16.mxu1 %v2153_v10 }
 0x72a   :  { %v447_v25 = vpop.f32.mrb[2].mxu1 }
 0x72b   :  { %v448_v61 = vadd.f32 %v2262_v20, %v447_v25  ;;  %v1733_v62 = vpop.f32.mrb[3].mxu1 }
 0x72d   :  { %v2409_v1 = vadd.f32 %v448_v61, %v2230_v0 }
 0x72f   :  { %v452_v2 = vsel %vm47_vm0, %v2409_v1, 0.0 }
 0x730   :  { %453 = vadd.xlane.f32.xlu0 %v452_v2 }
 0x7bd   :  { %v454_v35 = vpop.xlane.xlu0 %453 }
 0x7be   :  { %v455_v5 = vmul.f32 0.03125, %v454_v35 }
 0x7c0   :  { %v456_v6 = vsub.f32 %v2409_v1, %v455_v5 }
 0x7c2   :  { %v457_v7 = vmul.f32 %v456_v6, %v456_v6 }
 0x7c4   :  { %v458_v37 = vsel %vm47_vm0, %v457_v7, 0.0 }
 0x7c5   :  { %459 = vadd.xlane.f32.xlu1 %v458_v37 }
 0x852   :  { %v460_v8 = vpop.xlane.xlu1 %459 }
 0x853   :  { %v461_v9 = vmul.f32 0.03125, %v460_v8 }
 0x855   :  { %v462_v11 = vadd.f32 1e-05, %v461_v9 }
 0x857   :  { %2103 = vrsqrt.f32 %v462_v11 }
 0x861   :  { %v2104_v20 = vpop.eup %2103 }
 0x862   :  { %v464_v12 = vmul.f32 %v2104_v20, %v456_v6 }
 0x864   :  { %1743 = vmatmul.mubr.msk.f32.vlgmr.msra.gmra.mrb[4].mxu1 %vm47_vm0, %v464_v12  ;;  %v1511_v12 = vld [vmem:[%s2706_s4 + $0x20] sm:$0xff] }
 0x865   :  { %1977 = vmatpush3.bf16.msra.mxu1 %v2305_v45  ;;  %1777 = vmatprep.mubr.msk.f32.mxu1 %vm2154_vm1, %v2155_v13 }
 0x866   :  { %1978 = vmatprep.subr.bf16.mxu1 %v2153_v10 }
 0x869   :  { %1980 = vmatpush3.bf16.msra.mxu1 %v2315_v48 }
 0x86a   :  { %1981 = vmatprep.subr.bf16.mxu1 %v2153_v10 }
 0x86d   :  { %1983 = vmatpush3.bf16.msra.mxu1 %v2325_v51 }
 0x86e   :  { %1984 = vmatprep.subr.bf16.mxu1 %v2153_v10 }
 0x871   :  { %1986 = vmatpush3.bf16.msra.mxu1 %v2335_v54 }
 0x872   :  { %1987 = vmatprep.subr.bf16.mxu1 %v2153_v10 }
 0x875   :  { %1989 = vmatpush3.bf16.msra.mxu1 %v2345_v57 }
 0x876   :  { %1990 = vmatprep.subr.bf16.mxu1 %v2153_v10 }
 0x879   :  { %1992 = vmatpush3.bf16.msra.mxu1 %v2355_v60 }
 0x87a   :  { %1993 = vmatprep.subr.bf16.mxu1 %v2153_v10 }
 0x87d   :  { %1995 = vmatpush3.bf16.msra.mxu1 %v2365_v63 }
 0x87e   :  { %1996 = vmatprep.subr.bf16.mxu1 %v2153_v10 }
 0x881   :  { %1998 = vmatpush3.bf16.msra.mxu1 %v2375_v3 }
 0x882   :  { %2035 = vmatprep.subr.bf16.mxu1 %v2153_v10 }
 0x937   :  { %v534_v0 = vpop.f32.mrb[4].mxu1 }
 0x938   :  { %v535_v45 = vadd.f32 %v2382_v4, %v534_v0  ;;  %v1744_v48 = vpop.f32.mrb[5].mxu1  ;;  %v1513_v0 = vld [vmem:[%s2706_s4 + $0x30] sm:$0xff] }
 0x939   :  { %v1514_v48 = vld [vmem:[%s2706_s4 + $0x38] sm:$0xff] }
 0x93a   :  { %v539_v51 = vmul.f32 0.70710677, %v535_v45  ;;  %v538_v31 = vmul.f32 0.5, %v535_v45 }
 0x93c   :  { %v540_v54 = vand.u32 2147483647, %v539_v51  ;;  %vm560_vm3 = vcmp.ge.f32.partialorder %v539_v51, 0.0  ;;  %v2492_v51 = vpack.c.bf16 %v1514_v48, %v1513_v0  ;;  %v1234_v0 = vld [vmem:[%s2711_s9 + $0x8] sm:$0xff] }
 0x93e   :  { %v541_v57 = vmul.f32 0.3275911, %v540_v54  ;;  %v554_v60 = vsub.f32 0.0, %v540_v54 }
 0x940   :  { %v542_v14 = vadd.f32 1.0, %v541_v57  ;;  %v555_v16 = vmul.f32 %v554_v60, %v540_v54 }
 0x942   :  { %2105 = vrcp.f32 %v542_v14  ;;  %v556_v18 = vmul.f32 1.442695, %v555_v16  ;;  %v1518_v16 = vld [vmem:[%s2708_s6 + $0x80] sm:$0xff] }
 0x944   :  { %2107 = vpow2.f32 %v556_v18  ;;  %v1520_v18 = vld [vmem:[%s2708_s6 + $0x90] sm:$0xff] }
 0x94c   :  { %v2106_v15 = vpop.eup %2105 }
 0x94d   :  { %v545_v17 = vmul.f32 1.0614054, %v2106_v15 }
 0x94e   :  { %v2108_v26 = vpop.eup %2107 }
 0x94f   :  { %v546_v63 = vadd.f32 -1.4531521, %v545_v17  ;;  %v1519_v17 = vld [vmem:[%s2708_s6 + $0x88] sm:$0xff] }
 0x951   :  { %v547_v19 = vmul.f32 %v2106_v15, %v546_v63  ;;  %v2506_v63 = vpack.c.bf16 %v1519_v17, %v1518_v16  ;;  %v1236_v16 = vld [vmem:[%s2711_s9 + $0x18] sm:$0xff] }
 0x953   :  { %v548_v21 = vadd.f32 1.4214138, %v547_v19  ;;  %v1521_v19 = vld [vmem:[%s2708_s6 + $0x98] sm:$0xff] }
 0x955   :  { %v549_v3 = vmul.f32 %v2106_v15, %v548_v21  ;;  %v2516_v21 = vpack.c.bf16 %v1521_v19, %v1520_v18  ;;  %v2605_v18 = vld [vmem:[%s2709_s7 + $0x1] ss:$0 sm:$0xff] }
 0x957   :  { %v550_v22 = vadd.f32 -0.28449672, %v549_v3  ;;  %v1522_v3 = vld [vmem:[%s2708_s6 + $0xa0] sm:$0xff] }
 0x959   :  { %v551_v23 = vmul.f32 %v2106_v15, %v550_v22  ;;  %v1523_v22 = vld [vmem:[%s2708_s6 + $0xa8] sm:$0xff] }
 0x95b   :  { %v552_v24 = vadd.f32 0.2548296, %v551_v23  ;;  %v2526_v23 = vpack.c.bf16 %v1523_v22, %v1522_v3 }
 0x95d   :  { %v553_v4 = vmul.f32 %v2106_v15, %v552_v24  ;;  %v1524_v24 = vld [vmem:[%s2708_s6 + $0xb0] sm:$0xff] }
 0x95f   :  { %v558_v27 = vmul.f32 %v2108_v26, %v553_v4  ;;  %v1525_v4 = vld [vmem:[%s2708_s6 + $0xb8] sm:$0xff] }
 0x960   :  { %v2536_v26 = vpack.c.bf16 %v1525_v4, %v1524_v24 }
 0x961   :  { %v559_v28 = vsub.f32 1.0, %v558_v27  ;;  %v1526_v27 = vld [vmem:[%s2708_s6 + $0xc0] sm:$0xff] }
 0x963   :  { %v561_v29 = vsub.f32 0.0, %v559_v28 }
 0x965   :  { %v562_v30 = vsel %vm560_vm3, %v559_v28, %v561_v29  ;;  %v1527_v28 = vld [vmem:[%s2708_s6 + $0xc8] sm:$0xff] }
 0x966   :  { %v563_v32 = vadd.f32 1.0, %v562_v30  ;;  %v2546_v29 = vpack.c.bf16 %v1527_v28, %v1526_v27  ;;  %v1528_v30 = vld [vmem:[%s2708_s6 + $0xd0] sm:$0xff] }
 0x968   :  { %v564_v33 = vmul.f32 %v563_v32, %v538_v31  ;;  %v1529_v31 = vld [vmem:[%s2708_s6 + $0xd8] sm:$0xff] }
 0x969   :  { %v2556_v32 = vpack.c.bf16 %v1529_v31, %v1528_v30 }
 0x96a   :  { %1778 = vmatmul.mubr.f32.vlgmr.msra.gmra.mrb[6].mxu1 %v564_v33  ;;  %v1530_v33 = vld [vmem:[%s2708_s6 + $0xe0] sm:$0xff] }
 0x96b   :  { %1845 = vmatprep.mubr.msk.f32.mxu1 %vm2154_vm1, %v2155_v13 }
 0xa3d   :  { %v631_v34 = vpop.f32.mrb[6].mxu1 }
 0xa3e   :  { %v632_v36 = vadd.f32 %v2390_v39, %v631_v34  ;;  %v1779_v38 = vpop.f32.mrb[7].mxu1  ;;  %v1504_v39 = vld [vmem:[%s2704_s2 + $0x20] sm:$0xff]  ;;  %v1531_v34 = vld [vmem:[%s2708_s6 + $0xe8] sm:$0xff] }
 0xa3f   :  { %v2000_v53 = vpack.c.bf16 %v1505_v50, %v1504_v39  ;;  %v1532_v38 = vld [vmem:[%s2708_s6 + $0xf0] sm:$0xff] }
 0xa40   :  { %v2439_v40 = vadd.f32 %v632_v36, %v2409_v1  ;;  %v2467_v1 = vld [vmem:[%s2705_s3 + $0x1] ss:$0 sm:$0xff]  ;;  %v2566_v36 = vpack.c.bf16 %v1531_v34, %v1530_v33 }
 0xa41   :  { %2001 = vmatpush3.bf16.msra.mxu0 %v2000_v53  ;;  %2037 = vmatpush3.bf16.msra.mxu1 %v2000_v53 }
 0xa42   :  { %v636_v41 = vsel %vm47_vm0, %v2439_v40, 0.0  ;;  %2002 = vmatprep.subr.bf16.mxu0 %v2153_v10  ;;  %2038 = vmatprep.subr.bf16.mxu1 %v2153_v10 }
 0xa43   :  { %637 = vadd.xlane.f32.xlu0 %v636_v41  ;;  %v1533_v41 = vld [vmem:[%s2708_s6 + $0xf8] sm:$0xff] }
 0xa45   :  { %2004 = vmatpush3.bf16.msra.mxu0 %v2003_v56  ;;  %2040 = vmatpush3.bf16.msra.mxu1 %v2003_v56 }
 0xa46   :  { %2005 = vmatprep.subr.bf16.mxu0 %v2153_v10  ;;  %2041 = vmatprep.subr.bf16.mxu1 %v2153_v10 }
 0xad0   :  { %v638_v42 = vpop.xlane.xlu0 %637 }
 0xad1   :  { %v639_v44 = vmul.f32 0.03125, %v638_v42  ;;  %v2576_v42 = vpack.c.bf16 %v1533_v41, %v1532_v38 }
 0xad3   :  { %v640_v46 = vsub.f32 %v2439_v40, %v639_v44  ;;  %v2583_v44 = vld [vmem:[%s2707_s5 + $0x1] ss:$0 sm:$0xff] }
 0xad5   :  { %v641_v47 = vmul.f32 %v640_v46, %v640_v46 }
 0xad7   :  { %v642_v49 = vsel %vm47_vm0, %v641_v47, 0.0 }
 0xad8   :  { %643 = vadd.xlane.f32.xlu1 %v642_v49 }
 0xb65   :  { %v644_v58 = vpop.xlane.xlu1 %643 }
 0xb66   :  { %v645_v59 = vmul.f32 0.03125, %v644_v58 }
 0xb68   :  { %v646_v25 = vadd.f32 1e-05, %v645_v59 }
 0xb6a   :  { %2109 = vrsqrt.f32 %v646_v25 }
 0xb74   :  { %v2110_v61 = vpop.eup %2109 }
 0xb75   :  { %v648_v62 = vmul.f32 %v2110_v61, %v640_v46 }
 0xb77   :  { %1789 = vmatmul.mubr.msk.f32.vlgmr.msra.gmra.mrb[4].mxu0 %vm47_vm0, %v648_v62 }
 0xb78   :  { %1799 = vmatprep.mubr.msk.f32.mxu0 %vm2154_vm1, %v2155_v13 }
 0xc4a   :  { %v731_v2 = vpop.f32.mrb[4].mxu0 }
 0xc4b   :  { %v732_v35 = vadd.f32 %v2467_v1, %v731_v2  ;;  %v1790_v5 = vpop.f32.mrb[5].mxu0 }
 0xc4d   :  { %v2471_v6 = vadd.f32 %v732_v35, %v2394_v43  ;;  %v1512_v43 = vld [vmem:[%s2706_s4 + $0x28] sm:$0xff] }
 0xc4e   :  { %v2486_v45 = vpack.c.bf16 %v1512_v43, %v1511_v12  ;;  %v1233_v43 = vld [vmem:[%s2711_s9] sm:$0xff] }
 0xc4f   :  { %v736_v7 = vsel %vm47_vm0, %v2471_v6, 0.0 }
 0xc50   :  { %737 = vadd.xlane.f32.xlu0 %v736_v7  ;;  %2007 = vmatpush3.bf16.msra.mxu0 %v2486_v45 }
 0xc51   :  { %2008 = vmatprep.subr.bf16.mxu0 %v2153_v10 }
 0xc54   :  { %2010 = vmatpush3.bf16.msra.mxu0 %v2492_v51 }
 0xc55   :  { %2011 = vmatprep.subr.bf16.mxu0 %v2153_v10 }
 0xcdd   :  { %v738_v37 = vpop.xlane.xlu0 %737 }
 0xcde   :  { %v739_v8 = vmul.f32 0.03125, %v738_v37 }
 0xce0   :  { %v740_v9 = vsub.f32 %v2471_v6, %v739_v8 }
 0xce2   :  { %v741_v11 = vmul.f32 %v740_v9, %v740_v9 }
 0xce4   :  { %v742_v20 = vsel %vm47_vm0, %v741_v11, 0.0 }
 0xce5   :  { %743 = vadd.xlane.f32.xlu1 %v742_v20 }
 0xd72   :  { %v744_v54 = vpop.xlane.xlu1 %743 }
 0xd73   :  { %v745_v57 = vmul.f32 0.03125, %v744_v54 }
 0xd75   :  { %v746_v14 = vadd.f32 1e-05, %v745_v57 }
 0xd77   :  { %2111 = vrsqrt.f32 %v746_v14  ;;  %v2072_v14 = vpack.c.bf16 %v1234_v0, %v1233_v43 }
 0xd81   :  { %v2112_v60 = vpop.eup %2111 }
 0xd82   :  { %v748_v15 = vmul.f32 %v2112_v60, %v740_v9 }
 0xd84   :  { %1800 = vmatmul.mubr.msk.f32.vlgmr.msra.gmra.mrb[6].mxu0 %vm47_vm0, %v748_v15  ;;  %v1235_v15 = vld [vmem:[%s2711_s9 + $0x10] sm:$0xff] }
 0xd85   :  { %1834 = vmatprep.mubr.msk.f32.mxu0 %vm2154_vm1, %v2155_v13  ;;  %2013 = vmatpush3.bf16.msra.mxu0 %v2506_v63  ;;  %v2075_v17 = vpack.c.bf16 %v1236_v16, %v1235_v15 }
 0xd86   :  { %2014 = vmatprep.subr.bf16.mxu0 %v2153_v10 }
 0xd89   :  { %2016 = vmatpush3.bf16.msra.mxu0 %v2516_v21 }
 0xd8a   :  { %2017 = vmatprep.subr.bf16.mxu0 %v2153_v10 }
 0xd8d   :  { %2019 = vmatpush3.bf16.msra.mxu0 %v2526_v23 }
 0xd8e   :  { %2020 = vmatprep.subr.bf16.mxu0 %v2153_v10 }
 0xd91   :  { %2022 = vmatpush3.bf16.msra.mxu0 %v2536_v26 }
 0xd92   :  { %2023 = vmatprep.subr.bf16.mxu0 %v2153_v10 }
 0xd95   :  { %2025 = vmatpush3.bf16.msra.mxu0 %v2546_v29 }
 0xd96   :  { %2026 = vmatprep.subr.bf16.mxu0 %v2153_v10 }
 0xd99   :  { %2028 = vmatpush3.bf16.msra.mxu0 %v2556_v32 }
 0xd9a   :  { %2029 = vmatprep.subr.bf16.mxu0 %v2153_v10 }
 0xd9d   :  { %2031 = vmatpush3.bf16.msra.mxu0 %v2566_v36 }
 0xd9e   :  { %2032 = vmatprep.subr.bf16.mxu0 %v2153_v10 }
 0xda1   :  { %2034 = vmatpush3.bf16.msra.mxu0 %v2576_v42 }
 0xda2   :  { %2071 = vmatprep.subr.bf16.mxu0 %v2153_v10 }
 0xe57   :  { %v831_v46 = vpop.f32.mrb[6].mxu0 }
 0xe58   :  { %v832_v47 = vadd.f32 %v2583_v44, %v831_v46  ;;  %v1801_v49 = vpop.f32.mrb[7].mxu0 }
 0xe5a   :  { %v836_v39 = vmul.f32 0.70710677, %v832_v47  ;;  %v835_v54 = vmul.f32 0.5, %v832_v47 }
 0xe5c   :  { %v837_v50 = vand.u32 2147483647, %v836_v39  ;;  %vm857_vm4 = vcmp.ge.f32.partialorder %v836_v39, 0.0 }
 0xe5e   :  { %v838_v52 = vmul.f32 0.3275911, %v837_v50  ;;  %v851_v55 = vsub.f32 0.0, %v837_v50 }
 0xe60   :  { %v839_v53 = vadd.f32 1.0, %v838_v52  ;;  %v852_v58 = vmul.f32 %v851_v55, %v837_v50 }
 0xe62   :  { %2113 = vrcp.f32 %v839_v53  ;;  %v853_v61 = vmul.f32 1.442695, %v852_v58 }
 0xe64   :  { %2115 = vpow2.f32 %v853_v61 }
 0xe6c   :  { %v2114_v56 = vpop.eup %2113 }
 0xe6d   :  { %v842_v59 = vmul.f32 1.0614054, %v2114_v56 }
 0xe6e   :  { %v2116_v9 = vpop.eup %2115 }
 0xe6f   :  { %v843_v25 = vadd.f32 -1.4531521, %v842_v59 }
 0xe71   :  { %v844_v62 = vmul.f32 %v2114_v56, %v843_v25 }
 0xe73   :  { %v845_v2 = vadd.f32 1.4214138, %v844_v62 }
 0xe75   :  { %v846_v35 = vmul.f32 %v2114_v56, %v845_v2 }
 0xe77   :  { %v847_v5 = vadd.f32 -0.28449672, %v846_v35 }
 0xe79   :  { %v848_v7 = vmul.f32 %v2114_v56, %v847_v5 }
 0xe7b   :  { %v849_v37 = vadd.f32 0.2548296, %v848_v7 }
 0xe7d   :  { %v850_v8 = vmul.f32 %v2114_v56, %v849_v37 }
 0xe7f   :  { %v855_v11 = vmul.f32 %v2116_v9, %v850_v8 }
 0xe81   :  { %v856_v20 = vsub.f32 1.0, %v855_v11 }
 0xe83   :  { %v858_v12 = vsub.f32 0.0, %v856_v20 }
 0xe85   :  { %v859_v48 = vsel %vm857_vm4, %v856_v20, %v858_v12 }
 0xe86   :  { %v860_v57 = vadd.f32 1.0, %v859_v48 }
 0xe88   :  { %v861_v60 = vmul.f32 %v860_v57, %v835_v54 }
 0xe8a   :  { %1835 = vmatmul.mubr.f32.vlgmr.msra.gmra.mrb[8].mxu0 %v861_v60 }
 0xe8b   :  { %2073 = vmatpush3.bf16.msra.mxu0 %v2072_v14  ;;  %1902 = vmatprep.mubr.msk.f32.mxu0 %vm2154_vm1, %v2155_v13 }
 0xe8c   :  { %2074 = vmatprep.subr.bf16.mxu0 %v2153_v10 }
 0xe8f   :  { %2076 = vmatpush3.bf16.msra.mxu0 %v2075_v17 }
 0xe90   :  { %2077 = vmatprep.subr.bf16.mxu0 %v2153_v10 }
 0xf5d   :  { %v953_v19 = vpop.f32.mrb[8].mxu0 }
 0xf5e   :  { %v954_v3 = vadd.f32 %v2605_v18, %v953_v19  ;;  %v1836_v22 = vpop.f32.mrb[9].mxu0 }
 0xf5f   :  { %v1231_v22 = vld [vmem:[%s2710_s8 + $0x10] sm:$0xff] }
 0xf60   :  { %v957_v24 = vadd.f32 %v954_v3, %v2471_v6 }
 0xf62   :  { %1903 = vmatmul.mubr.msk.f32.vlgmr.msra.gmra.mrb[10].mxu0 %vm47_vm0, %v957_v24  ;;  %v958_v4 = vsel %vm47_vm0, %v957_v24, 0.0 }
 0xf63   :  { %959 = vadd.xlane.f32.xlu0 %v958_v4  ;;  %1913 = vmatprep.mubr.msk.f32.mxu0 %vm2154_vm1, %v2155_v13 }
 0xff0   :  { %v960_v27 = vpop.xlane.xlu0 %959 }
 0xff1   :  { %v961_v28 = vmul.f32 0.03125, %v960_v27 }
 0xff3   :  { %v962_v30 = vsub.f32 %v957_v24, %v961_v28  ;;  %v1232_v24 = vld [vmem:[%s2710_s8 + $0x18] sm:$0xff] }
 0xff4   :  { %v2081_v4 = vpack.c.bf16 %v1232_v24, %v1231_v22 }
 0xff5   :  { %v963_v31 = vmul.f32 %v962_v30, %v962_v30 }
 0xff7   :  { %v964_v33 = vsel %vm47_vm0, %v963_v31, 0.0 }
 0xff8   :  { %965 = vadd.xlane.f32.xlu1 %v964_v33  ;;  %v1392_v33 = vld [vmem:[%s2713_s11] sm:$0xff] }
0x1035   :  { %v2614_v34 = vpop.f32.mrb[10].mxu0 }
0x1036   :  { %v1904_v38 = vpop.f32.mrb[11].mxu0 }
0x1037   :  { %v1393_v38 = vld [vmem:[%s2713_s11 + $0x8] sm:$0xff] }
0x1085   :  { %v966_v41 = vpop.xlane.xlu1 %965 }
0x1086   :  { %v967_v6 = vmul.f32 0.03125, %v966_v41  ;;  %v2084_v41 = vpack.c.bf16 %v1393_v38, %v1392_v33 }
0x1088   :  { %v968_v46 = vadd.f32 1e-05, %v967_v6 }
0x108a   :  { %2117 = vrsqrt.f32 %v968_v46 }
0x1094   :  { %v2118_v47 = vpop.eup %2117 }
0x1095   :  { %v970_v49 = vmul.f32 %v2118_v47, %v962_v30  ;;  %v1540_v47 = vld [vmem:[%s2712_s10] ss:$0 sm:$0xff]  ;;  %s2156_s10 = smov [#allocation2]  }
0x1097   :  { %1846 = vmatmul.mubr.msk.f32.vlgmr.msra.gmra.mrb[8].mxu1 %vm47_vm0, %v970_v49 }
0x1098   :  { %2043 = vmatpush3.bf16.msra.mxu1 %v2486_v45  ;;  %1856 = vmatprep.mubr.msk.f32.mxu1 %vm2154_vm1, %v2155_v13 }
0x1099   :  { %2044 = vmatprep.subr.bf16.mxu1 %v2153_v10 }
0x109c   :  { %2046 = vmatpush3.bf16.msra.mxu1 %v2492_v51 }
0x109d   :  { %2047 = vmatprep.subr.bf16.mxu1 %v2153_v10 }
0x116a   :  { %v1040_v39 = vpop.f32.mrb[8].mxu1 }
0x116b   :  { %v1041_v50 = vadd.f32 %v2467_v1, %v1040_v39  ;;  %v1847_v52 = vpop.f32.mrb[9].mxu1 }
0x116c   :  { %v1541_v52 = vld [vmem:[%s2714_s12] ss:$0 sm:$0xff] }
0x116d   :  { %v2625_v53 = vadd.f32 %v1041_v50, %v2439_v40  ;;  %v1229_v40 = vld [vmem:[%s2710_s8] sm:$0xff] }
0x116f   :  { %v1045_v55 = vsel %vm47_vm0, %v2625_v53, 0.0 }
0x1170   :  { %1046 = vadd.xlane.f32.xlu0 %v1045_v55 }
0x11fd   :  { %v1047_v45 = vpop.xlane.xlu0 %1046 }
0x11fe   :  { %v1048_v56 = vmul.f32 0.03125, %v1047_v45 }
0x1200   :  { %v1049_v58 = vsub.f32 %v2625_v53, %v1048_v56 }
0x1202   :  { %v1050_v59 = vmul.f32 %v1049_v58, %v1049_v58 }
0x1204   :  { %v1051_v51 = vsel %vm47_vm0, %v1050_v59, 0.0 }
0x1205   :  { %1052 = vadd.xlane.f32.xlu1 %v1051_v51 }
0x1292   :  { %v1053_v25 = vpop.xlane.xlu1 %1052 }
0x1293   :  { %v1054_v61 = vmul.f32 0.03125, %v1053_v25 }
0x1295   :  { %v1055_v62 = vadd.f32 1e-05, %v1054_v61 }
0x1297   :  { %2119 = vrsqrt.f32 %v1055_v62 }
0x12a1   :  { %v2120_v1 = vpop.eup %2119 }
0x12a2   :  { %v1057_v2 = vmul.f32 %v2120_v1, %v1049_v58 }
0x12a4   :  { %1857 = vmatmul.mubr.msk.f32.vlgmr.msra.gmra.mrb[10].mxu1 %vm47_vm0, %v1057_v2 }
0x12a5   :  { %2049 = vmatpush3.bf16.msra.mxu1 %v2506_v63  ;;  %1891 = vmatprep.mubr.msk.f32.mxu1 %vm2154_vm1, %v2155_v13  ;;  %v1230_v63 = vld [vmem:[%s2710_s8 + $0x8] sm:$0xff] }
0x12a6   :  { %2050 = vmatprep.subr.bf16.mxu1 %v2153_v10 }
0x12a9   :  { %2052 = vmatpush3.bf16.msra.mxu1 %v2516_v21  ;;  %v2078_v21 = vpack.c.bf16 %v1230_v63, %v1229_v40 }
0x12aa   :  { %2053 = vmatprep.subr.bf16.mxu1 %v2153_v10 }
0x12ab   :  { %2079 = vmatpush3.bf16.msra.mxu0 %v2078_v21 }
0x12ac   :  { %2080 = vmatprep.subr.bf16.mxu0 %v2153_v10 }
0x12ad   :  { %2055 = vmatpush3.bf16.msra.mxu1 %v2526_v23 }
0x12ae   :  { %2056 = vmatprep.subr.bf16.mxu1 %v2153_v10 }
0x12af   :  { %2082 = vmatpush3.bf16.msra.mxu0 %v2081_v4 }
0x12b0   :  { %2083 = vmatprep.subr.bf16.mxu0 %v2153_v10 }
0x12b1   :  { %2058 = vmatpush3.bf16.msra.mxu1 %v2536_v26 }
0x12b2   :  { %2059 = vmatprep.subr.bf16.mxu1 %v2153_v10 }
0x12b5   :  { %2061 = vmatpush3.bf16.msra.mxu1 %v2546_v29 }
0x12b6   :  { %2062 = vmatprep.subr.bf16.mxu1 %v2153_v10 }
0x12b9   :  { %2064 = vmatpush3.bf16.msra.mxu1 %v2556_v32 }
0x12ba   :  { %2065 = vmatprep.subr.bf16.mxu1 %v2153_v10 }
0x12bd   :  { %2067 = vmatpush3.bf16.msra.mxu1 %v2566_v36 }
0x12be   :  { %2068 = vmatprep.subr.bf16.mxu1 %v2153_v10 }
0x12c1   :  { %2070 = vmatpush3.bf16.msra.mxu1 %v2576_v42 }
0x1377   :  { %v1127_v23 = vpop.f32.mrb[10].mxu1 }
0x1378   :  { %v1128_v26 = vadd.f32 %v2583_v44, %v1127_v23  ;;  %v1858_v29 = vpop.f32.mrb[11].mxu1 }
0x137a   :  { %v1132_v32 = vmul.f32 0.70710677, %v1128_v26  ;;  %v1131_v17 = vmul.f32 0.5, %v1128_v26 }
0x137c   :  { %v1133_v36 = vand.u32 2147483647, %v1132_v32  ;;  %vm1153_vm5 = vcmp.ge.f32.partialorder %v1132_v32, 0.0 }
0x137e   :  { %v1134_v35 = vmul.f32 0.3275911, %v1133_v36  ;;  %v1147_v5 = vsub.f32 0.0, %v1133_v36 }
0x1380   :  { %v1135_v42 = vadd.f32 1.0, %v1134_v35  ;;  %v1148_v37 = vmul.f32 %v1147_v5, %v1133_v36 }
0x1382   :  { %2121 = vrcp.f32 %v1135_v42  ;;  %v1149_v11 = vmul.f32 1.442695, %v1148_v37 }
0x1384   :  { %2123 = vpow2.f32 %v1149_v11 }
0x138c   :  { %v2122_v7 = vpop.eup %2121 }
0x138d   :  { %v1138_v8 = vmul.f32 1.0614054, %v2122_v7 }
0x138e   :  { %v2124_v57 = vpop.eup %2123 }
0x138f   :  { %v1139_v9 = vadd.f32 -1.4531521, %v1138_v8 }
0x1391   :  { %v1140_v20 = vmul.f32 %v2122_v7, %v1139_v9 }
0x1393   :  { %v1141_v12 = vadd.f32 1.4214138, %v1140_v20 }
0x1395   :  { %v1142_v43 = vmul.f32 %v2122_v7, %v1141_v12 }
0x1397   :  { %v1143_v0 = vadd.f32 -0.28449672, %v1142_v43 }
0x1399   :  { %v1144_v48 = vmul.f32 %v2122_v7, %v1143_v0 }
0x139b   :  { %v1145_v54 = vadd.f32 0.2548296, %v1144_v48 }
0x139d   :  { %v1146_v44 = vmul.f32 %v2122_v7, %v1145_v54 }
0x139f   :  { %v1151_v14 = vmul.f32 %v2124_v57, %v1146_v44 }
0x13a1   :  { %v1152_v60 = vsub.f32 1.0, %v1151_v14 }
0x13a3   :  { %v1154_v15 = vsub.f32 0.0, %v1152_v60 }
0x13a5   :  { %v1155_v16 = vsel %vm1153_vm5, %v1152_v60, %v1154_v15 }
0x13a6   :  { %v1156_v19 = vadd.f32 1.0, %v1155_v16 }
0x13a8   :  { %v1157_v3 = vmul.f32 %v1156_v19, %v1131_v17 }
0x13aa   :  { %1892 = vmatmul.mubr.f32.vlgmr.msra.gmra.mrb[12].mxu1 %v1157_v3 }
0x147d   :  { %v1224_v27 = vpop.f32.mrb[12].mxu1 }
0x147e   :  { %v1225_v28 = vadd.f32 %v2605_v18, %v1224_v27  ;;  %v1893_v30 = vpop.f32.mrb[13].mxu1  ;;  %v1394_v18 = vld [vmem:[%s2713_s11 + $0x10] sm:$0xff] }
0x1480   :  { %v1228_v31 = vadd.f32 %v1225_v28, %v2625_v53 }
0x1482   :  { %1914 = vmatmul.mubr.msk.f32.vlgmr.msra.gmra.mrb[12].mxu0 %vm47_vm0, %v1228_v31 }
0x1483   :  { %1924 = vmatprep.mubr.msk.f32.mxu0 %vm2154_vm1, %v2155_v13  ;;  %2085 = vmatpush3.bf16.msra.mxu0 %v2084_v41  ;;  %v1395_v13 = vld [vmem:[%s2713_s11 + $0x18] sm:$0xff]  ;;  %s1489_s11 = sshll.u32 %s2156_s10, 4  ;;  %s1490_s11 = int_to_ptr.vmem [resolvable:$true] %s1489_s11 }
0x1484   :  { %2086 = vmatprep.subr.bf16.mxu0 %v2153_v10  ;;  %v2087_v6 = vpack.c.bf16 %v1395_v13, %v1394_v18  ;;  %s2129_s16 = scalar_lea.vmem %s1490_s11, 128  ;;  %p2134_p1 = scmp.lt.s32.totalorder %s1490_s11, %s1490_s11 }
0x1485   :  { %p2130_p0 = scmp.ne.s32.totalorder %s1490_s11, %s2129_s16  ;;  %p2135_p2 = scmp.lt.s32.totalorder %s2129_s16, %s2129_s16 }
0x1487   :  { %2088 = vmatpush3.bf16.msra.mxu0 %v2087_v6  ;;  %p2136_p3 = por %p2135_p2, %p2134_p1 }
0x1489   :  { %p2137_p4 = pnand %p2136_p3, %p2130_p0 }
0x1555   :  { %v1379_v46 = vpop.f32.mrb[12].mxu0 }
0x1556   :  { %v1380_v49 = vadd.f32 %v1379_v46, %v2614_v34  ;;  %v1915_v39 = vpop.f32.mrb[13].mxu0 }
0x1558   :  { %v1390_v50 = vadd.f32 %v1540_v47, %v1380_v49 }
0x155a   :  { %v1391_v10 = vmax.f32 %v1390_v50, 0.0 }
0x155c   :  { %1925 = vmatmul.mubr.msk.f32.vlgmr.msra.gmra.mrb[14].mxu0 %vm47_vm0, %v1391_v10 }
0x162f   :  { %v1472_v53 = vpop.f32.mrb[14].mxu0 }
0x1630   :  { %v1473_v55 = vadd.f32 %v1541_v52, %v1472_v53  ;;  %v1926_v45 = vpop.f32.mrb[15].mxu0 }
0x1632   :  { %v1476_v56 = vsub.f32 0.0, %v1473_v55 }
0x1634   :  { %v1477_v58 = vmul.f32 1.442695, %v1476_v56 }
0x1636   :  { %2125 = vpow2.f32 %v1477_v58 }
0x1640   :  { %v2126_v59 = vpop.eup %2125 }
0x1641   :  { %v1479_v51 = vadd.f32 1.0, %v2126_v59 }
0x1643   :  { %2127 = vrcp.f32 %v1479_v51 }
0x164d   :  { %v2128_v34 = vpop.eup %2127 }
0x164e   :  { %1482 = vst [vmem:[#allocation2] sm:$0xff] %v2128_v34 }
0x164f   :  { %2140 = shalt.err (!%p2137_p4)
}
0x1650   :  { %s2141_s17 = scalar_lea.hbm %s2715_s13, 128 }
0x1651   :  { %p2142_p5 = scmp.ne.s32.totalorder %s2715_s13, %s2141_s17  ;;  %p2145_p6 = scmp.lt.u32.totalorder %s2141_s17, %s2715_s13 }
0x1653   :  { %p2147_p7 = pnand %p2145_p6, %p2142_p5 }
0x1655   :  { %2150 = shalt.err (!%p2147_p7)
}
0x1656   :  { %1492 = dma.vmem_to_hbm [thread:$0]  %s1490_s11, 128, %s2715_s13, [#allocation3]  }
0x1657   :  { %2151 = dma.done.wait [#allocation3], 128  }
0x1658   :  { %2152 = vsyncadd [#allocation3], 4294967168 }
0x1659   :  { %1496 = vsyncpa [#allocation3], 1 }

</bundles_post_ra>
